<compile_context>
chip_gen: v5e
topology: v5e:2x2
jax: 0.10.0
libtpu: 0.0.40
codegen_flags: <defaults>
</compile_context>

<pallas_src>
import numpy as np
import jax
import jax.numpy as jnp
from jax.experimental import pallas as pl
from jax.experimental.pallas import tpu as pltpu

BN_EPS = 1e-5


# ------------------------------ fused kernel ------------------------------- #

def _fused_forward_kernel(p_ref, w1_ref, t1_ref, w2_ref, t2_ref,
                          bf1_ref, wf2_ref, bf2_ref, wf1_hbm,
                          o_ref, wf1_vmem, a2_buf, dma_sems):
    """Fused conv1+BN+ReLU -> conv2+BN+ReLU -> flatten -> fc1+ReLU -> fc2.

    p_ref  : (24, N*384) conv1 im2col patches; rows ordered
             (conv2-parity g, ci, kw), columns ordered (n, h2, w2).
    w1_ref : (16, 24) block-diagonal conv1 weight (BN scale folded in).
    t1_ref : (16, 1)  folded conv1 bias + BN shift (tiled per parity block).
    w2_ref : (6, 16)  concatenated conv2 weight (BN scale folded in).
    t2_ref : (6, 1)   folded conv2 bias + BN shift.
    wf1_hbm: (6, 384, 128) bf16 fc1 weight, stays in HBM; chunked manual DMA.
    wf2_ref: (128, A) bf16 fc2 weight.
    """
    N = o_ref.shape[0]
    NB = p_ref.shape[1]          # N * 384
    S = NB // N                  # 384 = 16 * 24
    C2 = t2_ref.shape[0]         # 6

    # Kick off the chunked fc1-weight HBM->VMEM DMAs; they overlap with the
    # conv matmuls and are waited on one chunk at a time in the fc1 loop.
    for c in range(C2):
        pltpu.make_async_copy(wf1_hbm.at[c], wf1_vmem.at[c],
                              dma_sems.at[c]).start()

    # ---- conv1 (+ folded bias/BN) + ReLU : ONE matmul (16,24)@(24,NB) ----- #
    a1 = jnp.dot(w1_ref[...], p_ref[...], preferred_element_type=jnp.float32)
    a1 = jnp.maximum(a1 + t1_ref[...], 0.0)                  # (16, N*384)

    # ---- conv2 (+ folded bias/BN) + ReLU : ONE matmul (6,16)@(16,NB) ------ #
    a2 = jnp.dot(w2_ref[...], a1, preferred_element_type=jnp.float32)
    a2 = jnp.maximum(a2 + t2_ref[...], 0.0)                  # (6, N*384) f32

    # ---- NCHW flatten: per-sample 128-aligned lane slices -> (C2, N, S) --- #
    for n in range(N):
        a2_buf[:, n, :] = a2[:, n * S:(n + 1) * S].astype(jnp.bfloat16)

    # ---- fc1 (+ bias) + ReLU: C2 matmuls with (N, S) LHS, f32 accumulate -- #
    h = jnp.zeros((N, 128), jnp.float32)
    for c in range(C2):
        pltpu.make_async_copy(wf1_hbm.at[c], wf1_vmem.at[c],
                              dma_sems.at[c]).wait()
        h = h + jnp.dot(a2_buf[c], wf1_vmem[c],
                        preferred_element_type=jnp.float32)
    h = jnp.maximum(h + bf1_ref[...], 0.0).astype(jnp.bfloat16)   # (N, 128)

    # ---- fc2: ONE (N,128)@(128,A) matmul, ONE store ----------------------- #
    o_ref[...] = (jnp.dot(h, wf2_ref[...], preferred_element_type=jnp.float32)
                  + bf2_ref[...])


# ------------------------------ host wrappers ------------------------------ #

def _build_conv1_patches(x):
    """conv1 im2col, block-diagonal row order.

    P[(hp*2+wp)*6 + ci*3 + kw, (n*16 + h2)*24 + w2]
        = x[n, ci, 2*h2 + hp, 4*w2 + 2*wp + kw]
    """
    N, Cin, H0, W0 = x.shape
    assert Cin == 2, Cin
    H2 = H0 // 2                       # 16
    W2 = ((W0 - 3) // 2 + 1) // 2      # 24
    assert (H2, W2) == (16, 24), (H2, W2)   # fc1 expects 6*16*24 features
    rows = []
    for hp in range(2):
        for wp in range(2):
            for ci in range(Cin):
                for kw in range(3):
                    rows.append(x[:, ci, hp::2, 2 * wp + kw::4][:, :H2, :W2])
    t = jnp.stack(rows, axis=0)                    # (24, N, 16, 24)
    return t.reshape(4 * Cin * 3, N * H2 * W2)     # (24, N*384)


@jax.jit
def model_forward(x, prep):
    N = x.shape[0]
    n_actions = prep["wf2t"].shape[1]
    patches = _build_conv1_patches(x)
    vmem = lambda: pl.BlockSpec(memory_space=pltpu.MemorySpace.VMEM)
    return pl.pallas_call(
        _fused_forward_kernel,
        out_shape=jax.ShapeDtypeStruct((N, n_actions), jnp.float32),
        in_specs=[vmem() for _ in range(8)] + [pl.BlockSpec(memory_space=pl.ANY)],
        out_specs=vmem(),
        scratch_shapes=[
            pltpu.VMEM(prep["wf1t"].shape, jnp.bfloat16),       # fc1 weight buf
            pltpu.VMEM((prep["wf1t"].shape[0], N, 16 * 24), jnp.bfloat16),
            pltpu.SemaphoreType.DMA((prep["wf1t"].shape[0],)),  # per-chunk sems
        ],
    )(patches, prep["w1bd"], prep["t1bd"], prep["w2cat"], prep["t2"],
      prep["bf1"], prep["wf2t"], prep["bf2"], prep["wf1t"])


# ----------------------------- parameter init ------------------------------ #

def init_params(key, n_actions):
    ks = jax.random.split(key, 6)
    # conv1: (out=4, in=2, kh=1, kw=3) -- kaiming normal, fan_out = 4*1*3
    w1 = jax.random.normal(ks[0], (4, 2, 1, 3), jnp.float32) * np.sqrt(2.0 / (4 * 1 * 3))
    b1 = jax.random.uniform(ks[1], (4,), jnp.float32, -1.0, 1.0) / np.sqrt(2 * 1 * 3)
    # conv2: (out=6, in=4, kh=2, kw=2) -- kaiming normal, fan_out = 6*2*2
    w2 = jax.random.normal(ks[2], (6, 4, 2, 2), jnp.float32) * np.sqrt(2.0 / (6 * 2 * 2))
    b2 = jax.random.uniform(ks[3], (6,), jnp.float32, -1.0, 1.0) / np.sqrt(4 * 2 * 2)
    # fc1: (128, 2304) normal(0, 0.01), bias 0 ; fc2: (n_actions, 128)
    wf1 = jax.random.normal(ks[4], (128, 6 * 16 * 24), jnp.float32) * 0.01
    bf1 = jnp.zeros((128,), jnp.float32)
    wf2 = jax.random.normal(ks[5], (n_actions, 128), jnp.float32) * 0.01
    bf2 = jnp.zeros((n_actions,), jnp.float32)
    # BatchNorm (eval mode, PyTorch defaults: gamma=1, beta=0, mean=0, var=1)
    scale1 = jnp.full((4,), 1.0 / np.sqrt(1.0 + BN_EPS), jnp.float32)
    shift1 = jnp.zeros((4,), jnp.float32)
    scale2 = jnp.full((6,), 1.0 / np.sqrt(1.0 + BN_EPS), jnp.float32)
    shift2 = jnp.zeros((6,), jnp.float32)
    return dict(w1=w1, b1=b1, scale1=scale1, shift1=shift1,
                w2=w2, b2=b2, scale2=scale2, shift2=shift2,
                wf1=wf1, bf1=bf1, wf2=wf2, bf2=bf2)


def prepare_params(p):
    """One-time (out of the hot path) weight re-layout + bias/BN folding."""
    c1 = p["w1"].shape[0]                     # 4
    c2 = p["w2"].shape[0]                     # 6
    k1 = p["w1"].shape[1] * p["w1"].shape[3]  # 6
    S = 16 * 24                               # 384

    # conv1 block (co, ci*3+kw) with BN scale folded in; bias+shift folded.
    w1b = p["w1"].reshape(c1, k1) * p["scale1"][:, None]                 # (4, 6)
    t1b = p["b1"] * p["scale1"] + p["shift1"]                            # (4,)
    # Block-diagonal conv1 weight over the 4 conv2 (kh,kw)-parity blocks.
    w1bd = jnp.zeros((4 * c1, 4 * k1), jnp.float32)                      # (16, 24)
    for g in range(4):
        w1bd = w1bd.at[g * c1:(g + 1) * c1, g * k1:(g + 1) * k1].set(w1b)
    t1bd = jnp.tile(t1b, 4)[:, None]                                     # (16, 1)

    # conv2: concatenate the 4 per-tap (co, ci) weights -> (6, 16), scale folded.
    w2g = (jnp.transpose(p["w2"], (2, 3, 0, 1)).reshape(4, c2, c1)
           * p["scale2"][None, :, None])                                 # (4, 6, 4)
    w2cat = jnp.concatenate([w2g[g] for g in range(4)], axis=1)          # (6, 16)
    t2 = (p["b2"] * p["scale2"] + p["shift2"])[:, None]                  # (6, 1)

    # fc weights pre-transposed, bf16 for MXU / halved HBM traffic.
    # fc1 weight chunked per flatten c-block: (6, 384, 128); stays in HBM.
    wf1t = jnp.transpose(p["wf1"]).reshape(c2, S, 128).astype(jnp.bfloat16)
    bf1 = p["bf1"][None, :]                                              # (1, 128)
    wf2t = jnp.transpose(p["wf2"]).astype(jnp.bfloat16)                  # (128, A)
    bf2 = p["bf2"][None, :]                                              # (1, A)
    return dict(w1bd=w1bd, t1bd=t1bd, w2cat=w2cat, t2=t2,
                wf1t=wf1t, bf1=bf1, wf2t=wf2t, bf2=bf2)


# ------------------------------ pure-JAX reference ------------------------- #

def reference_forward(x, p):
    dn = ("NCHW", "OIHW", "NCHW")
    hi = jax.lax.Precision.HIGHEST
    y = jax.lax.conv_general_dilated(x, p["w1"], (1, 2), "VALID",
                                     dimension_numbers=dn, precision=hi)
    y = (y + p["b1"][None, :, None, None]) * p["scale1"][None, :, None, None] \
        + p["shift1"][None, :, None, None]
    y = jnp.maximum(y, 0.0)
    y = jax.lax.conv_general_dilated(y, p["w2"], (2, 2), "VALID",
                                     dimension_numbers=dn, precision=hi)
    y = (y + p["b2"][None, :, None, None]) * p["scale2"][None, :, None, None] \
        + p["shift2"][None, :, None, None]
    y = jnp.maximum(y, 0.0)
    y = y.reshape(y.shape[0], -1)
    h = jnp.maximum(jnp.dot(y, p["wf1"].T, precision=hi) + p["bf1"], 0.0)
    return jnp.dot(h, p["wf2"].T, precision=hi) + p["bf2"]


# ----------------------------------- main ----------------------------------- #

if __name__ == "__main__":
    key = jax.random.PRNGKey(0)
    k_x, k_p = jax.random.split(key)

    N, n_actions = 2, 8
    # Input shape implied by the module: fc1 expects 6*16*24 features
    # => conv2 out 16x24 => conv1 out 32x48 => input (N, 2, 32, 97) NCHW.
    x = jax.random.normal(k_x, (N, 2, 32, 97), jnp.float32)
    params = init_params(k_p, n_actions)
    prep = prepare_params(params)

    out = jax.block_until_ready(model_forward(x, prep))
    ref = jax.block_until_ready(reference_forward(x, params))

    assert out.shape == (N, n_actions), out.shape
    assert np.all(np.isfinite(np.asarray(out)))
    err = np.max(np.abs(np.asarray(out) - np.asarray(ref)))
    assert np.allclose(np.asarray(out), np.asarray(ref), atol=2e-2, rtol=2e-2), err

    print("KERNEL_OK")
</pallas_src>

<mosaic_0001>
module attributes {stable_mosaic.version = 11 : i64} {
  func.func @_fused_forward_kernel(%arg0: memref<24x768xf32, #tpu.memory_space<vmem>>, %arg1: memref<16x24xf32, #tpu.memory_space<vmem>>, %arg2: memref<16x1xf32, #tpu.memory_space<vmem>>, %arg3: memref<6x16xf32, #tpu.memory_space<vmem>>, %arg4: memref<6x1xf32, #tpu.memory_space<vmem>>, %arg5: memref<1x128xf32, #tpu.memory_space<vmem>>, %arg6: memref<128x8xbf16, #tpu.memory_space<vmem>>, %arg7: memref<1x8xf32, #tpu.memory_space<vmem>>, %arg8: memref<6x384x128xbf16, #tpu.memory_space<any>>, %arg9: memref<2x8xf32, #tpu.memory_space<vmem>>, %arg10: memref<6x384x128xbf16, #tpu.memory_space<vmem>>, %arg11: memref<6x2x384xbf16, #tpu.memory_space<vmem>>, %arg12: memref<6x!tpu.dma_semaphore, #tpu.memory_space<semaphore_mem>>) attributes {dimension_semantics = [], scalar_prefetch = 0 : i64, scratch_operands = 3 : i64, tpu.core_type = #tpu.core_type<tc>} {
    %c0_i32 = arith.constant 0 : i32
    %c0_i32_0 = arith.constant 0 : i32
    %c0_i32_1 = arith.constant 0 : i32
    %c0_i32_2 = arith.constant 0 : i32
    %c0_i32_3 = arith.constant 0 : i32
    %0 = tpu.memref_slice %arg8[%c0_i32, %c0_i32_2, %c0_i32_3] : memref<6x384x128xbf16, #tpu.memory_space<any>> -> memref<1x384x128xbf16, #tpu.memory_space<any>>
    %1 = tpu.memref_squeeze %0 : memref<1x384x128xbf16, #tpu.memory_space<any>> -> memref<384x128xbf16, #tpu.memory_space<any>>
    %c0_i32_4 = arith.constant 0 : i32
    %c0_i32_5 = arith.constant 0 : i32
    %2 = tpu.memref_slice %arg10[%c0_i32_0, %c0_i32_4, %c0_i32_5] : memref<6x384x128xbf16, #tpu.memory_space<vmem>> -> memref<1x384x128xbf16, #tpu.memory_space<vmem>>
    %3 = tpu.memref_squeeze %2 : memref<1x384x128xbf16, #tpu.memory_space<vmem>> -> memref<384x128xbf16, #tpu.memory_space<vmem>>
    %4 = tpu.memref_slice %arg12[%c0_i32_1] : memref<6x!tpu.dma_semaphore, #tpu.memory_space<semaphore_mem>> -> memref<1x!tpu.dma_semaphore, #tpu.memory_space<semaphore_mem>>
    %5 = tpu.memref_squeeze %4 : memref<1x!tpu.dma_semaphore, #tpu.memory_space<semaphore_mem>> -> memref<!tpu.dma_semaphore, #tpu.memory_space<semaphore_mem>>
    tpu.enqueue_dma source(%1 : memref<384x128xbf16, #tpu.memory_space<any>>) target(%3 : memref<384x128xbf16, #tpu.memory_space<vmem>>) target_semaphore(%5 : memref<!tpu.dma_semaphore, #tpu.memory_space<semaphore_mem>>)
    %c1_i32 = arith.constant 1 : i32
    %c1_i32_6 = arith.constant 1 : i32
    %c1_i32_7 = arith.constant 1 : i32
    %c0_i32_8 = arith.constant 0 : i32
    %c0_i32_9 = arith.constant 0 : i32
    %6 = tpu.memref_slice %arg8[%c1_i32, %c0_i32_8, %c0_i32_9] : memref<6x384x128xbf16, #tpu.memory_space<any>> -> memref<1x384x128xbf16, #tpu.memory_space<any>>
    %7 = tpu.memref_squeeze %6 : memref<1x384x128xbf16, #tpu.memory_space<any>> -> memref<384x128xbf16, #tpu.memory_space<any>>
    %c0_i32_10 = arith.constant 0 : i32
    %c0_i32_11 = arith.constant 0 : i32
    %8 = tpu.memref_slice %arg10[%c1_i32_6, %c0_i32_10, %c0_i32_11] : memref<6x384x128xbf16, #tpu.memory_space<vmem>> -> memref<1x384x128xbf16, #tpu.memory_space<vmem>>
    %9 = tpu.memref_squeeze %8 : memref<1x384x128xbf16, #tpu.memory_space<vmem>> -> memref<384x128xbf16, #tpu.memory_space<vmem>>
    %10 = tpu.memref_slice %arg12[%c1_i32_7] : memref<6x!tpu.dma_semaphore, #tpu.memory_space<semaphore_mem>> -> memref<1x!tpu.dma_semaphore, #tpu.memory_space<semaphore_mem>>
    %11 = tpu.memref_squeeze %10 : memref<1x!tpu.dma_semaphore, #tpu.memory_space<semaphore_mem>> -> memref<!tpu.dma_semaphore, #tpu.memory_space<semaphore_mem>>
    tpu.enqueue_dma source(%7 : memref<384x128xbf16, #tpu.memory_space<any>>) target(%9 : memref<384x128xbf16, #tpu.memory_space<vmem>>) target_semaphore(%11 : memref<!tpu.dma_semaphore, #tpu.memory_space<semaphore_mem>>)
    %c2_i32 = arith.constant 2 : i32
    %c2_i32_12 = arith.constant 2 : i32
    %c2_i32_13 = arith.constant 2 : i32
    %c0_i32_14 = arith.constant 0 : i32
    %c0_i32_15 = arith.constant 0 : i32
    %12 = tpu.memref_slice %arg8[%c2_i32, %c0_i32_14, %c0_i32_15] : memref<6x384x128xbf16, #tpu.memory_space<any>> -> memref<1x384x128xbf16, #tpu.memory_space<any>>
    %13 = tpu.memref_squeeze %12 : memref<1x384x128xbf16, #tpu.memory_space<any>> -> memref<384x128xbf16, #tpu.memory_space<any>>
    %c0_i32_16 = arith.constant 0 : i32
    %c0_i32_17 = arith.constant 0 : i32
    %14 = tpu.memref_slice %arg10[%c2_i32_12, %c0_i32_16, %c0_i32_17] : memref<6x384x128xbf16, #tpu.memory_space<vmem>> -> memref<1x384x128xbf16, #tpu.memory_space<vmem>>
    %15 = tpu.memref_squeeze %14 : memref<1x384x128xbf16, #tpu.memory_space<vmem>> -> memref<384x128xbf16, #tpu.memory_space<vmem>>
    %16 = tpu.memref_slice %arg12[%c2_i32_13] : memref<6x!tpu.dma_semaphore, #tpu.memory_space<semaphore_mem>> -> memref<1x!tpu.dma_semaphore, #tpu.memory_space<semaphore_mem>>
    %17 = tpu.memref_squeeze %16 : memref<1x!tpu.dma_semaphore, #tpu.memory_space<semaphore_mem>> -> memref<!tpu.dma_semaphore, #tpu.memory_space<semaphore_mem>>
    tpu.enqueue_dma source(%13 : memref<384x128xbf16, #tpu.memory_space<any>>) target(%15 : memref<384x128xbf16, #tpu.memory_space<vmem>>) target_semaphore(%17 : memref<!tpu.dma_semaphore, #tpu.memory_space<semaphore_mem>>)
    %c3_i32 = arith.constant 3 : i32
    %c3_i32_18 = arith.constant 3 : i32
    %c3_i32_19 = arith.constant 3 : i32
    %c0_i32_20 = arith.constant 0 : i32
    %c0_i32_21 = arith.constant 0 : i32
    %18 = tpu.memref_slice %arg8[%c3_i32, %c0_i32_20, %c0_i32_21] : memref<6x384x128xbf16, #tpu.memory_space<any>> -> memref<1x384x128xbf16, #tpu.memory_space<any>>
    %19 = tpu.memref_squeeze %18 : memref<1x384x128xbf16, #tpu.memory_space<any>> -> memref<384x128xbf16, #tpu.memory_space<any>>
    %c0_i32_22 = arith.constant 0 : i32
    %c0_i32_23 = arith.constant 0 : i32
    %20 = tpu.memref_slice %arg10[%c3_i32_18, %c0_i32_22, %c0_i32_23] : memref<6x384x128xbf16, #tpu.memory_space<vmem>> -> memref<1x384x128xbf16, #tpu.memory_space<vmem>>
    %21 = tpu.memref_squeeze %20 : memref<1x384x128xbf16, #tpu.memory_space<vmem>> -> memref<384x128xbf16, #tpu.memory_space<vmem>>
    %22 = tpu.memref_slice %arg12[%c3_i32_19] : memref<6x!tpu.dma_semaphore, #tpu.memory_space<semaphore_mem>> -> memref<1x!tpu.dma_semaphore, #tpu.memory_space<semaphore_mem>>
    %23 = tpu.memref_squeeze %22 : memref<1x!tpu.dma_semaphore, #tpu.memory_space<semaphore_mem>> -> memref<!tpu.dma_semaphore, #tpu.memory_space<semaphore_mem>>
    tpu.enqueue_dma source(%19 : memref<384x128xbf16, #tpu.memory_space<any>>) target(%21 : memref<384x128xbf16, #tpu.memory_space<vmem>>) target_semaphore(%23 : memref<!tpu.dma_semaphore, #tpu.memory_space<semaphore_mem>>)
    %c4_i32 = arith.constant 4 : i32
    %c4_i32_24 = arith.constant 4 : i32
    %c4_i32_25 = arith.constant 4 : i32
    %c0_i32_26 = arith.constant 0 : i32
    %c0_i32_27 = arith.constant 0 : i32
    %24 = tpu.memref_slice %arg8[%c4_i32, %c0_i32_26, %c0_i32_27] : memref<6x384x128xbf16, #tpu.memory_space<any>> -> memref<1x384x128xbf16, #tpu.memory_space<any>>
    %25 = tpu.memref_squeeze %24 : memref<1x384x128xbf16, #tpu.memory_space<any>> -> memref<384x128xbf16, #tpu.memory_space<any>>
    %c0_i32_28 = arith.constant 0 : i32
    %c0_i32_29 = arith.constant 0 : i32
    %26 = tpu.memref_slice %arg10[%c4_i32_24, %c0_i32_28, %c0_i32_29] : memref<6x384x128xbf16, #tpu.memory_space<vmem>> -> memref<1x384x128xbf16, #tpu.memory_space<vmem>>
    %27 = tpu.memref_squeeze %26 : memref<1x384x128xbf16, #tpu.memory_space<vmem>> -> memref<384x128xbf16, #tpu.memory_space<vmem>>
    %28 = tpu.memref_slice %arg12[%c4_i32_25] : memref<6x!tpu.dma_semaphore, #tpu.memory_space<semaphore_mem>> -> memref<1x!tpu.dma_semaphore, #tpu.memory_space<semaphore_mem>>
    %29 = tpu.memref_squeeze %28 : memref<1x!tpu.dma_semaphore, #tpu.memory_space<semaphore_mem>> -> memref<!tpu.dma_semaphore, #tpu.memory_space<semaphore_mem>>
    tpu.enqueue_dma source(%25 : memref<384x128xbf16, #tpu.memory_space<any>>) target(%27 : memref<384x128xbf16, #tpu.memory_space<vmem>>) target_semaphore(%29 : memref<!tpu.dma_semaphore, #tpu.memory_space<semaphore_mem>>)
    %c5_i32 = arith.constant 5 : i32
    %c5_i32_30 = arith.constant 5 : i32
    %c5_i32_31 = arith.constant 5 : i32
    %c0_i32_32 = arith.constant 0 : i32
    %c0_i32_33 = arith.constant 0 : i32
    %30 = tpu.memref_slice %arg8[%c5_i32, %c0_i32_32, %c0_i32_33] : memref<6x384x128xbf16, #tpu.memory_space<any>> -> memref<1x384x128xbf16, #tpu.memory_space<any>>
    %31 = tpu.memref_squeeze %30 : memref<1x384x128xbf16, #tpu.memory_space<any>> -> memref<384x128xbf16, #tpu.memory_space<any>>
    %c0_i32_34 = arith.constant 0 : i32
    %c0_i32_35 = arith.constant 0 : i32
    %32 = tpu.memref_slice %arg10[%c5_i32_30, %c0_i32_34, %c0_i32_35] : memref<6x384x128xbf16, #tpu.memory_space<vmem>> -> memref<1x384x128xbf16, #tpu.memory_space<vmem>>
    %33 = tpu.memref_squeeze %32 : memref<1x384x128xbf16, #tpu.memory_space<vmem>> -> memref<384x128xbf16, #tpu.memory_space<vmem>>
    %34 = tpu.memref_slice %arg12[%c5_i32_31] : memref<6x!tpu.dma_semaphore, #tpu.memory_space<semaphore_mem>> -> memref<1x!tpu.dma_semaphore, #tpu.memory_space<semaphore_mem>>
    %35 = tpu.memref_squeeze %34 : memref<1x!tpu.dma_semaphore, #tpu.memory_space<semaphore_mem>> -> memref<!tpu.dma_semaphore, #tpu.memory_space<semaphore_mem>>
    tpu.enqueue_dma source(%31 : memref<384x128xbf16, #tpu.memory_space<any>>) target(%33 : memref<384x128xbf16, #tpu.memory_space<vmem>>) target_semaphore(%35 : memref<!tpu.dma_semaphore, #tpu.memory_space<semaphore_mem>>)
    %c0 = arith.constant 0 : index
    %c0_36 = arith.constant 0 : index
    %36 = vector.load %arg1[%c0, %c0_36] : memref<16x24xf32, #tpu.memory_space<vmem>>, vector<16x24xf32>
    %c0_37 = arith.constant 0 : index
    %c0_38 = arith.constant 0 : index
    %37 = vector.load %arg0[%c0_37, %c0_38] : memref<24x768xf32, #tpu.memory_space<vmem>>, vector<24x768xf32>
    %cst = arith.constant dense<0.000000e+00> : vector<16x768xf32>
    %38 = tpu.matmul %36, %37, %cst {dimension_numbers = #tpu.dot_dimension_numbers<[1], [0], [0], [1], [0, 0, 1, 1], [], []>} : vector<16x24xf32>, vector<24x768xf32>, vector<16x768xf32> -> vector<16x768xf32>
    %c0_39 = arith.constant 0 : index
    %c0_40 = arith.constant 0 : index
    %39 = vector.load %arg2[%c0_39, %c0_40] : memref<16x1xf32, #tpu.memory_space<vmem>>, vector<16x1xf32>
    %40 = vector.broadcast %39 : vector<16x1xf32> to vector<16x768xf32>
    %41 = arith.addf %38, %40 : vector<16x768xf32>
    %cst_41 = arith.constant 0.000000e+00 : f32
    %42 = vector.broadcast %cst_41 : f32 to vector<16x768xf32>
    %43 = arith.maximumf %41, %42 : vector<16x768xf32>
    %c0_42 = arith.constant 0 : index
    %c0_43 = arith.constant 0 : index
    %44 = vector.load %arg3[%c0_42, %c0_43] : memref<6x16xf32, #tpu.memory_space<vmem>>, vector<6x16xf32>
    %cst_44 = arith.constant dense<0.000000e+00> : vector<6x768xf32>
    %45 = tpu.matmul %44, %43, %cst_44 {dimension_numbers = #tpu.dot_dimension_numbers<[1], [0], [0], [1], [0, 0, 1, 1], [], []>} : vector<6x16xf32>, vector<16x768xf32>, vector<6x768xf32> -> vector<6x768xf32>
    %c0_45 = arith.constant 0 : index
    %c0_46 = arith.constant 0 : index
    %46 = vector.load %arg4[%c0_45, %c0_46] : memref<6x1xf32, #tpu.memory_space<vmem>>, vector<6x1xf32>
    %47 = vector.broadcast %46 : vector<6x1xf32> to vector<6x768xf32>
    %48 = arith.addf %45, %47 : vector<6x768xf32>
    %cst_47 = arith.constant 0.000000e+00 : f32
    %49 = vector.broadcast %cst_47 : f32 to vector<6x768xf32>
    %50 = arith.maximumf %48, %49 : vector<6x768xf32>
    %51 = vector.extract_strided_slice %50 {offsets = [0, 0], sizes = [6, 384], strides = [1, 1]} : vector<6x768xf32> to vector<6x384xf32>
    %52 = arith.truncf %51 : vector<6x384xf32> to vector<6x384xbf16>
    %c0_48 = arith.constant 0 : index
    %c0_49 = arith.constant 0 : index
    %c0_50 = arith.constant 0 : index
    %53 = vector.load %arg11[%c0_48, %c0_49, %c0_50] : memref<6x2x384xbf16, #tpu.memory_space<vmem>>, vector<6x1x384xbf16>
    %54 = vector.shape_cast %53 : vector<6x1x384xbf16> to vector<6x384xbf16>
    %55 = vector.shape_cast %52 : vector<6x384xbf16> to vector<6x1x384xbf16>
    tpu.vector_store %arg11[%c0_48, %c0_49, %c0_50], %55 {strides = array<i32>} : memref<6x2x384xbf16, #tpu.memory_space<vmem>>, vector<6x1x384xbf16>,
    %56 = vector.extract_strided_slice %50 {offsets = [0, 384], sizes = [6, 384], strides = [1, 1]} : vector<6x768xf32> to vector<6x384xf32>
    %57 = arith.truncf %56 : vector<6x384xf32> to vector<6x384xbf16>
    %c0_51 = arith.constant 0 : index
    %c1 = arith.constant 1 : index
    %c0_52 = arith.constant 0 : index
    %58 = vector.load %arg11[%c0_51, %c1, %c0_52] : memref<6x2x384xbf16, #tpu.memory_space<vmem>>, vector<6x1x384xbf16>
    %59 = vector.shape_cast %58 : vector<6x1x384xbf16> to vector<6x384xbf16>
    %60 = vector.shape_cast %57 : vector<6x384xbf16> to vector<6x1x384xbf16>
    tpu.vector_store %arg11[%c0_51, %c1, %c0_52], %60 {strides = array<i32>} : memref<6x2x384xbf16, #tpu.memory_space<vmem>>, vector<6x1x384xbf16>,
    %cst_53 = arith.constant 0.000000e+00 : f32
    %61 = vector.broadcast %cst_53 : f32 to vector<2x128xf32>
    %c0_i32_54 = arith.constant 0 : i32
    %c0_i32_55 = arith.constant 0 : i32
    %c0_i32_56 = arith.constant 0 : i32
    %c0_i32_57 = arith.constant 0 : i32
    %c0_i32_58 = arith.constant 0 : i32
    %62 = tpu.memref_slice %arg8[%c0_i32_54, %c0_i32_57, %c0_i32_58] : memref<6x384x128xbf16, #tpu.memory_space<any>> -> memref<1x384x128xbf16, #tpu.memory_space<any>>
    %63 = tpu.memref_squeeze %62 : memref<1x384x128xbf16, #tpu.memory_space<any>> -> memref<384x128xbf16, #tpu.memory_space<any>>
    %c0_i32_59 = arith.constant 0 : i32
    %c0_i32_60 = arith.constant 0 : i32
    %64 = tpu.memref_slice %arg10[%c0_i32_55, %c0_i32_59, %c0_i32_60] : memref<6x384x128xbf16, #tpu.memory_space<vmem>> -> memref<1x384x128xbf16, #tpu.memory_space<vmem>>
    %65 = tpu.memref_squeeze %64 : memref<1x384x128xbf16, #tpu.memory_space<vmem>> -> memref<384x128xbf16, #tpu.memory_space<vmem>>
    %66 = tpu.memref_slice %arg12[%c0_i32_56] : memref<6x!tpu.dma_semaphore, #tpu.memory_space<semaphore_mem>> -> memref<1x!tpu.dma_semaphore, #tpu.memory_space<semaphore_mem>>
    %67 = tpu.memref_squeeze %66 : memref<1x!tpu.dma_semaphore, #tpu.memory_space<semaphore_mem>> -> memref<!tpu.dma_semaphore, #tpu.memory_space<semaphore_mem>>
    tpu.wait_dma2 semaphore(%67 : memref<!tpu.dma_semaphore, #tpu.memory_space<semaphore_mem>>) src(%63 : memref<384x128xbf16, #tpu.memory_space<any>>) dst(%65 : memref<384x128xbf16, #tpu.memory_space<vmem>>)
    %c0_61 = arith.constant 0 : index
    %c0_62 = arith.constant 0 : index
    %c0_63 = arith.constant 0 : index
    %68 = vector.load %arg11[%c0_61, %c0_62, %c0_63] : memref<6x2x384xbf16, #tpu.memory_space<vmem>>, vector<1x2x384xbf16>
    %69 = vector.shape_cast %68 : vector<1x2x384xbf16> to vector<2x384xbf16>
    %c0_64 = arith.constant 0 : index
    %c0_65 = arith.constant 0 : index
    %c0_66 = arith.constant 0 : index
    %70 = vector.load %arg10[%c0_64, %c0_65, %c0_66] : memref<6x384x128xbf16, #tpu.memory_space<vmem>>, vector<1x384x128xbf16>
    %71 = vector.shape_cast %70 : vector<1x384x128xbf16> to vector<384x128xbf16>
    %cst_67 = arith.constant dense<0.000000e+00> : vector<2x128xf32>
    %72 = tpu.matmul %69, %71, %cst_67 {dimension_numbers = #tpu.dot_dimension_numbers<[1], [0], [0], [1], [0, 0, 1, 1], [], []>} : vector<2x384xbf16>, vector<384x128xbf16>, vector<2x128xf32> -> vector<2x128xf32>
    %73 = arith.addf %61, %72 : vector<2x128xf32>
    %c1_i32_68 = arith.constant 1 : i32
    %c1_i32_69 = arith.constant 1 : i32
    %c1_i32_70 = arith.constant 1 : i32
    %c0_i32_71 = arith.constant 0 : i32
    %c0_i32_72 = arith.constant 0 : i32
    %74 = tpu.memref_slice %arg8[%c1_i32_68, %c0_i32_71, %c0_i32_72] : memref<6x384x128xbf16, #tpu.memory_space<any>> -> memref<1x384x128xbf16, #tpu.memory_space<any>>
    %75 = tpu.memref_squeeze %74 : memref<1x384x128xbf16, #tpu.memory_space<any>> -> memref<384x128xbf16, #tpu.memory_space<any>>
    %c0_i32_73 = arith.constant 0 : i32
    %c0_i32_74 = arith.constant 0 : i32
    %76 = tpu.memref_slice %arg10[%c1_i32_69, %c0_i32_73, %c0_i32_74] : memref<6x384x128xbf16, #tpu.memory_space<vmem>> -> memref<1x384x128xbf16, #tpu.memory_space<vmem>>
    %77 = tpu.memref_squeeze %76 : memref<1x384x128xbf16, #tpu.memory_space<vmem>> -> memref<384x128xbf16, #tpu.memory_space<vmem>>
    %78 = tpu.memref_slice %arg12[%c1_i32_70] : memref<6x!tpu.dma_semaphore, #tpu.memory_space<semaphore_mem>> -> memref<1x!tpu.dma_semaphore, #tpu.memory_space<semaphore_mem>>
    %79 = tpu.memref_squeeze %78 : memref<1x!tpu.dma_semaphore, #tpu.memory_space<semaphore_mem>> -> memref<!tpu.dma_semaphore, #tpu.memory_space<semaphore_mem>>
    tpu.wait_dma2 semaphore(%79 : memref<!tpu.dma_semaphore, #tpu.memory_space<semaphore_mem>>) src(%75 : memref<384x128xbf16, #tpu.memory_space<any>>) dst(%77 : memref<384x128xbf16, #tpu.memory_space<vmem>>)
    %c1_75 = arith.constant 1 : index
    %c0_76 = arith.constant 0 : index
    %c0_77 = arith.constant 0 : index
    %80 = vector.load %arg11[%c1_75, %c0_76, %c0_77] : memref<6x2x384xbf16, #tpu.memory_space<vmem>>, vector<1x2x384xbf16>
    %81 = vector.shape_cast %80 : vector<1x2x384xbf16> to vector<2x384xbf16>
    %c1_78 = arith.constant 1 : index
    %c0_79 = arith.constant 0 : index
    %c0_80 = arith.constant 0 : index
    %82 = vector.load %arg10[%c1_78, %c0_79, %c0_80] : memref<6x384x128xbf16, #tpu.memory_space<vmem>>, vector<1x384x128xbf16>
    %83 = vector.shape_cast %82 : vector<1x384x128xbf16> to vector<384x128xbf16>
    %cst_81 = arith.constant dense<0.000000e+00> : vector<2x128xf32>
    %84 = tpu.matmul %81, %83, %cst_81 {dimension_numbers = #tpu.dot_dimension_numbers<[1], [0], [0], [1], [0, 0, 1, 1], [], []>} : vector<2x384xbf16>, vector<384x128xbf16>, vector<2x128xf32> -> vector<2x128xf32>
    %85 = arith.addf %73, %84 : vector<2x128xf32>
    %c2_i32_82 = arith.constant 2 : i32
    %c2_i32_83 = arith.constant 2 : i32
    %c2_i32_84 = arith.constant 2 : i32
    %c0_i32_85 = arith.constant 0 : i32
    %c0_i32_86 = arith.constant 0 : i32
    %86 = tpu.memref_slice %arg8[%c2_i32_82, %c0_i32_85, %c0_i32_86] : memref<6x384x128xbf16, #tpu.memory_space<any>> -> memref<1x384x128xbf16, #tpu.memory_space<any>>
    %87 = tpu.memref_squeeze %86 : memref<1x384x128xbf16, #tpu.memory_space<any>> -> memref<384x128xbf16, #tpu.memory_space<any>>
    %c0_i32_87 = arith.constant 0 : i32
    %c0_i32_88 = arith.constant 0 : i32
    %88 = tpu.memref_slice %arg10[%c2_i32_83, %c0_i32_87, %c0_i32_88] : memref<6x384x128xbf16, #tpu.memory_space<vmem>> -> memref<1x384x128xbf16, #tpu.memory_space<vmem>>
    %89 = tpu.memref_squeeze %88 : memref<1x384x128xbf16, #tpu.memory_space<vmem>> -> memref<384x128xbf16, #tpu.memory_space<vmem>>
    %90 = tpu.memref_slice %arg12[%c2_i32_84] : memref<6x!tpu.dma_semaphore, #tpu.memory_space<semaphore_mem>> -> memref<1x!tpu.dma_semaphore, #tpu.memory_space<semaphore_mem>>
    %91 = tpu.memref_squeeze %90 : memref<1x!tpu.dma_semaphore, #tpu.memory_space<semaphore_mem>> -> memref<!tpu.dma_semaphore, #tpu.memory_space<semaphore_mem>>
    tpu.wait_dma2 semaphore(%91 : memref<!tpu.dma_semaphore, #tpu.memory_space<semaphore_mem>>) src(%87 : memref<384x128xbf16, #tpu.memory_space<any>>) dst(%89 : memref<384x128xbf16, #tpu.memory_space<vmem>>)
    %c2 = arith.constant 2 : index
    %c0_89 = arith.constant 0 : index
    %c0_90 = arith.constant 0 : index
    %92 = vector.load %arg11[%c2, %c0_89, %c0_90] : memref<6x2x384xbf16, #tpu.memory_space<vmem>>, vector<1x2x384xbf16>
    %93 = vector.shape_cast %92 : vector<1x2x384xbf16> to vector<2x384xbf16>
    %c2_91 = arith.constant 2 : index
    %c0_92 = arith.constant 0 : index
    %c0_93 = arith.constant 0 : index
    %94 = vector.load %arg10[%c2_91, %c0_92, %c0_93] : memref<6x384x128xbf16, #tpu.memory_space<vmem>>, vector<1x384x128xbf16>
    %95 = vector.shape_cast %94 : vector<1x384x128xbf16> to vector<384x128xbf16>
    %cst_94 = arith.constant dense<0.000000e+00> : vector<2x128xf32>
    %96 = tpu.matmul %93, %95, %cst_94 {dimension_numbers = #tpu.dot_dimension_numbers<[1], [0], [0], [1], [0, 0, 1, 1], [], []>} : vector<2x384xbf16>, vector<384x128xbf16>, vector<2x128xf32> -> vector<2x128xf32>
    %97 = arith.addf %85, %96 : vector<2x128xf32>
    %c3_i32_95 = arith.constant 3 : i32
    %c3_i32_96 = arith.constant 3 : i32
    %c3_i32_97 = arith.constant 3 : i32
    %c0_i32_98 = arith.constant 0 : i32
    %c0_i32_99 = arith.constant 0 : i32
    %98 = tpu.memref_slice %arg8[%c3_i32_95, %c0_i32_98, %c0_i32_99] : memref<6x384x128xbf16, #tpu.memory_space<any>> -> memref<1x384x128xbf16, #tpu.memory_space<any>>
    %99 = tpu.memref_squeeze %98 : memref<1x384x128xbf16, #tpu.memory_space<any>> -> memref<384x128xbf16, #tpu.memory_space<any>>
    %c0_i32_100 = arith.constant 0 : i32
    %c0_i32_101 = arith.constant 0 : i32
    %100 = tpu.memref_slice %arg10[%c3_i32_96, %c0_i32_100, %c0_i32_101] : memref<6x384x128xbf16, #tpu.memory_space<vmem>> -> memref<1x384x128xbf16, #tpu.memory_space<vmem>>
    %101 = tpu.memref_squeeze %100 : memref<1x384x128xbf16, #tpu.memory_space<vmem>> -> memref<384x128xbf16, #tpu.memory_space<vmem>>
    %102 = tpu.memref_slice %arg12[%c3_i32_97] : memref<6x!tpu.dma_semaphore, #tpu.memory_space<semaphore_mem>> -> memref<1x!tpu.dma_semaphore, #tpu.memory_space<semaphore_mem>>
    %103 = tpu.memref_squeeze %102 : memref<1x!tpu.dma_semaphore, #tpu.memory_space<semaphore_mem>> -> memref<!tpu.dma_semaphore, #tpu.memory_space<semaphore_mem>>
    tpu.wait_dma2 semaphore(%103 : memref<!tpu.dma_semaphore, #tpu.memory_space<semaphore_mem>>) src(%99 : memref<384x128xbf16, #tpu.memory_space<any>>) dst(%101 : memref<384x128xbf16, #tpu.memory_space<vmem>>)
    %c3 = arith.constant 3 : index
    %c0_102 = arith.constant 0 : index
    %c0_103 = arith.constant 0 : index
    %104 = vector.load %arg11[%c3, %c0_102, %c0_103] : memref<6x2x384xbf16, #tpu.memory_space<vmem>>, vector<1x2x384xbf16>
    %105 = vector.shape_cast %104 : vector<1x2x384xbf16> to vector<2x384xbf16>
    %c3_104 = arith.constant 3 : index
    %c0_105 = arith.constant 0 : index
    %c0_106 = arith.constant 0 : index
    %106 = vector.load %arg10[%c3_104, %c0_105, %c0_106] : memref<6x384x128xbf16, #tpu.memory_space<vmem>>, vector<1x384x128xbf16>
    %107 = vector.shape_cast %106 : vector<1x384x128xbf16> to vector<384x128xbf16>
    %cst_107 = arith.constant dense<0.000000e+00> : vector<2x128xf32>
    %108 = tpu.matmul %105, %107, %cst_107 {dimension_numbers = #tpu.dot_dimension_numbers<[1], [0], [0], [1], [0, 0, 1, 1], [], []>} : vector<2x384xbf16>, vector<384x128xbf16>, vector<2x128xf32> -> vector<2x128xf32>
    %109 = arith.addf %97, %108 : vector<2x128xf32>
    %c4_i32_108 = arith.constant 4 : i32
    %c4_i32_109 = arith.constant 4 : i32
    %c4_i32_110 = arith.constant 4 : i32
    %c0_i32_111 = arith.constant 0 : i32
    %c0_i32_112 = arith.constant 0 : i32
    %110 = tpu.memref_slice %arg8[%c4_i32_108, %c0_i32_111, %c0_i32_112] : memref<6x384x128xbf16, #tpu.memory_space<any>> -> memref<1x384x128xbf16, #tpu.memory_space<any>>
    %111 = tpu.memref_squeeze %110 : memref<1x384x128xbf16, #tpu.memory_space<any>> -> memref<384x128xbf16, #tpu.memory_space<any>>
    %c0_i32_113 = arith.constant 0 : i32
    %c0_i32_114 = arith.constant 0 : i32
    %112 = tpu.memref_slice %arg10[%c4_i32_109, %c0_i32_113, %c0_i32_114] : memref<6x384x128xbf16, #tpu.memory_space<vmem>> -> memref<1x384x128xbf16, #tpu.memory_space<vmem>>
    %113 = tpu.memref_squeeze %112 : memref<1x384x128xbf16, #tpu.memory_space<vmem>> -> memref<384x128xbf16, #tpu.memory_space<vmem>>
    %114 = tpu.memref_slice %arg12[%c4_i32_110] : memref<6x!tpu.dma_semaphore, #tpu.memory_space<semaphore_mem>> -> memref<1x!tpu.dma_semaphore, #tpu.memory_space<semaphore_mem>>
    %115 = tpu.memref_squeeze %114 : memref<1x!tpu.dma_semaphore, #tpu.memory_space<semaphore_mem>> -> memref<!tpu.dma_semaphore, #tpu.memory_space<semaphore_mem>>
    tpu.wait_dma2 semaphore(%115 : memref<!tpu.dma_semaphore, #tpu.memory_space<semaphore_mem>>) src(%111 : memref<384x128xbf16, #tpu.memory_space<any>>) dst(%113 : memref<384x128xbf16, #tpu.memory_space<vmem>>)
    %c4 = arith.constant 4 : index
    %c0_115 = arith.constant 0 : index
    %c0_116 = arith.constant 0 : index
    %116 = vector.load %arg11[%c4, %c0_115, %c0_116] : memref<6x2x384xbf16, #tpu.memory_space<vmem>>, vector<1x2x384xbf16>
    %117 = vector.shape_cast %116 : vector<1x2x384xbf16> to vector<2x384xbf16>
    %c4_117 = arith.constant 4 : index
    %c0_118 = arith.constant 0 : index
    %c0_119 = arith.constant 0 : index
    %118 = vector.load %arg10[%c4_117, %c0_118, %c0_119] : memref<6x384x128xbf16, #tpu.memory_space<vmem>>, vector<1x384x128xbf16>
    %119 = vector.shape_cast %118 : vector<1x384x128xbf16> to vector<384x128xbf16>
    %cst_120 = arith.constant dense<0.000000e+00> : vector<2x128xf32>
    %120 = tpu.matmul %117, %119, %cst_120 {dimension_numbers = #tpu.dot_dimension_numbers<[1], [0], [0], [1], [0, 0, 1, 1], [], []>} : vector<2x384xbf16>, vector<384x128xbf16>, vector<2x128xf32> -> vector<2x128xf32>
    %121 = arith.addf %109, %120 : vector<2x128xf32>
    %c5_i32_121 = arith.constant 5 : i32
    %c5_i32_122 = arith.constant 5 : i32
    %c5_i32_123 = arith.constant 5 : i32
    %c0_i32_124 = arith.constant 0 : i32
    %c0_i32_125 = arith.constant 0 : i32
    %122 = tpu.memref_slice %arg8[%c5_i32_121, %c0_i32_124, %c0_i32_125] : memref<6x384x128xbf16, #tpu.memory_space<any>> -> memref<1x384x128xbf16, #tpu.memory_space<any>>
    %123 = tpu.memref_squeeze %122 : memref<1x384x128xbf16, #tpu.memory_space<any>> -> memref<384x128xbf16, #tpu.memory_space<any>>
    %c0_i32_126 = arith.constant 0 : i32
    %c0_i32_127 = arith.constant 0 : i32
    %124 = tpu.memref_slice %arg10[%c5_i32_122, %c0_i32_126, %c0_i32_127] : memref<6x384x128xbf16, #tpu.memory_space<vmem>> -> memref<1x384x128xbf16, #tpu.memory_space<vmem>>
    %125 = tpu.memref_squeeze %124 : memref<1x384x128xbf16, #tpu.memory_space<vmem>> -> memref<384x128xbf16, #tpu.memory_space<vmem>>
    %126 = tpu.memref_slice %arg12[%c5_i32_123] : memref<6x!tpu.dma_semaphore, #tpu.memory_space<semaphore_mem>> -> memref<1x!tpu.dma_semaphore, #tpu.memory_space<semaphore_mem>>
    %127 = tpu.memref_squeeze %126 : memref<1x!tpu.dma_semaphore, #tpu.memory_space<semaphore_mem>> -> memref<!tpu.dma_semaphore, #tpu.memory_space<semaphore_mem>>
    tpu.wait_dma2 semaphore(%127 : memref<!tpu.dma_semaphore, #tpu.memory_space<semaphore_mem>>) src(%123 : memref<384x128xbf16, #tpu.memory_space<any>>) dst(%125 : memref<384x128xbf16, #tpu.memory_space<vmem>>)
    %c5 = arith.constant 5 : index
    %c0_128 = arith.constant 0 : index
    %c0_129 = arith.constant 0 : index
    %128 = vector.load %arg11[%c5, %c0_128, %c0_129] : memref<6x2x384xbf16, #tpu.memory_space<vmem>>, vector<1x2x384xbf16>
    %129 = vector.shape_cast %128 : vector<1x2x384xbf16> to vector<2x384xbf16>
    %c5_130 = arith.constant 5 : index
    %c0_131 = arith.constant 0 : index
    %c0_132 = arith.constant 0 : index
    %130 = vector.load %arg10[%c5_130, %c0_131, %c0_132] : memref<6x384x128xbf16, #tpu.memory_space<vmem>>, vector<1x384x128xbf16>
    %131 = vector.shape_cast %130 : vector<1x384x128xbf16> to vector<384x128xbf16>
    %cst_133 = arith.constant dense<0.000000e+00> : vector<2x128xf32>
    %132 = tpu.matmul %129, %131, %cst_133 {dimension_numbers = #tpu.dot_dimension_numbers<[1], [0], [0], [1], [0, 0, 1, 1], [], []>} : vector<2x384xbf16>, vector<384x128xbf16>, vector<2x128xf32> -> vector<2x128xf32>
    %133 = arith.addf %121, %132 : vector<2x128xf32>
    %c0_134 = arith.constant 0 : index
    %c0_135 = arith.constant 0 : index
    %134 = vector.load %arg5[%c0_134, %c0_135] : memref<1x128xf32, #tpu.memory_space<vmem>>, vector<1x128xf32>
    %135 = vector.broadcast %134 : vector<1x128xf32> to vector<2x128xf32>
    %136 = arith.addf %133, %135 : vector<2x128xf32>
    %cst_136 = arith.constant 0.000000e+00 : f32
    %137 = vector.broadcast %cst_136 : f32 to vector<2x128xf32>
    %138 = arith.maximumf %136, %137 : vector<2x128xf32>
    %139 = arith.truncf %138 : vector<2x128xf32> to vector<2x128xbf16>
    %c0_137 = arith.constant 0 : index
    %c0_138 = arith.constant 0 : index
    %140 = vector.load %arg6[%c0_137, %c0_138] : memref<128x8xbf16, #tpu.memory_space<vmem>>, vector<128x8xbf16>
    %cst_139 = arith.constant dense<0.000000e+00> : vector<2x8xf32>
    %141 = tpu.matmul %139, %140, %cst_139 {dimension_numbers = #tpu.dot_dimension_numbers<[1], [0], [0], [1], [0, 0, 1, 1], [], []>} : vector<2x128xbf16>, vector<128x8xbf16>, vector<2x8xf32> -> vector<2x8xf32>
    %c0_140 = arith.constant 0 : index
    %c0_141 = arith.constant 0 : index
    %142 = vector.load %arg7[%c0_140, %c0_141] : memref<1x8xf32, #tpu.memory_space<vmem>>, vector<1x8xf32>
    %143 = vector.broadcast %142 : vector<1x8xf32> to vector<2x8xf32>
    %144 = arith.addf %141, %143 : vector<2x8xf32>
    %c0_142 = arith.constant 0 : index
    %c0_143 = arith.constant 0 : index
    %145 = vector.load %arg9[%c0_142, %c0_143] : memref<2x8xf32, #tpu.memory_space<vmem>>, vector<2x8xf32>
    tpu.vector_store %arg9[%c0_142, %c0_143], %144 {strides = array<i32>} : memref<2x8xf32, #tpu.memory_space<vmem>>, vector<2x8xf32>,
    return
  }
}

</mosaic_0001>

<bundles_post_ra>
// kernel: model_forward.1
= control target key start
LH: loop header
LB: loop body
LE: loop exit
PB: predicated region body
PF: predicated region fallthrough
CT: control target
= control target key end

     0   :  { %14 = vsyncpa [#allocation6], 0  ;;  %s4343_s0 = inlined_call_operand.vmem [shape: f32[24,768], index: 0, kind: input, shape index: {}]   ;;  %s4344_s1 = inlined_call_operand.vmem [shape: f32[16,24], index: 1, kind: input, shape index: {}]   ;;  %s4345_s2 = inlined_call_operand.vmem [shape: f32[16,1], index: 2, kind: input, shape index: {}]   ;;  %s4346_s3 = inlined_call_operand.vmem [shape: f32[6,16], index: 3, kind: input, shape index: {}]   ;;  %s4347_s4 = inlined_call_operand.vmem [shape: f32[6,1], index: 4, kind: input, shape index: {}]   ;;  %s4348_s5 = inlined_call_operand.vmem [shape: f32[1,128], index: 5, kind: input, shape index: {}]   ;;  %s4349_s6 = inlined_call_operand.vmem [shape: bf16[128,8], index: 6, kind: input, shape index: {}]   ;;  %s4350_s7 = inlined_call_operand.vmem [shape: f32[1,8], index: 7, kind: input, shape index: {}]   ;;  %s4351_s8 = inlined_call_operand.vmem [shape: bf16[6,384,128], index: 8, kind: input, shape index: {}]   ;;  %s4352_s9 = inlined_call_operand.hbm [shape: f32[2,8], index: 9, kind: output, shape index: {}]  }
   0x1   :  { %v41_v0 = vld [vmem:[%s4351_s8] sm:$0xff]  ;;  %v43_v1 = vld [vmem:[%s4351_s8 + $0x8] sm:$0xff]  ;;  %v45_v2 = vld [vmem:[%s4351_s8 + $0x10] sm:$0xff] }
   0x2   :  { %42 = vst [vmem:[#allocation2 + $0x2b0] sm:$0xff] %v41_v0  ;;  %v47_v3 = vld [vmem:[%s4351_s8 + $0x18] sm:$0xff]  ;;  %v49_v4 = vld [vmem:[%s4351_s8 + $0x20] sm:$0xff]  ;;  %v51_v5 = vld [vmem:[%s4351_s8 + $0x28] sm:$0xff] }
   0x3   :  { %44 = vst [vmem:[#allocation2 + $0x3b0] sm:$0xff] %v43_v1  ;;  %v53_v6 = vld [vmem:[%s4351_s8 + $0x30] sm:$0xff]  ;;  %v55_v7 = vld [vmem:[%s4351_s8 + $0x38] sm:$0xff]  ;;  %v57_v8 = vld [vmem:[%s4351_s8 + $0x40] sm:$0xff] }
   0x4   :  { %46 = vst [vmem:[#allocation2 + $0x10] sm:$0xff] %v45_v2  ;;  %v59_v9 = vld [vmem:[%s4351_s8 + $0x48] sm:$0xff]  ;;  %v61_v10 = vld [vmem:[%s4351_s8 + $0x50] sm:$0xff]  ;;  %v63_v11 = vld [vmem:[%s4351_s8 + $0x58] sm:$0xff] }
   0x5   :  { %48 = vst [vmem:[#allocation2 + $0x448] sm:$0xff] %v47_v3  ;;  %v65_v12 = vld [vmem:[%s4351_s8 + $0x60] sm:$0xff]  ;;  %v67_v13 = vld [vmem:[%s4351_s8 + $0x68] sm:$0xff]  ;;  %v69_v14 = vld [vmem:[%s4351_s8 + $0x70] sm:$0xff] }
   0x6   :  { %50 = vst [vmem:[#allocation2 + $0x320] sm:$0xff] %v49_v4  ;;  %v71_v15 = vld [vmem:[%s4351_s8 + $0x78] sm:$0xff]  ;;  %v73_v16 = vld [vmem:[%s4351_s8 + $0x80] sm:$0xff]  ;;  %v75_v17 = vld [vmem:[%s4351_s8 + $0x88] sm:$0xff] }
   0x7   :  { %52 = vst [vmem:[#allocation2 + $0x438] sm:$0xff] %v51_v5  ;;  %v77_v18 = vld [vmem:[%s4351_s8 + $0x90] sm:$0xff]  ;;  %v79_v19 = vld [vmem:[%s4351_s8 + $0x98] sm:$0xff]  ;;  %v81_v20 = vld [vmem:[%s4351_s8 + $0xa0] sm:$0xff] }
   0x8   :  { %54 = vst [vmem:[#allocation2 + $0x370] sm:$0xff] %v53_v6  ;;  %v83_v21 = vld [vmem:[%s4351_s8 + $0xa8] sm:$0xff]  ;;  %v85_v22 = vld [vmem:[%s4351_s8 + $0xb0] sm:$0xff]  ;;  %v87_v23 = vld [vmem:[%s4351_s8 + $0xb8] sm:$0xff] }
   0x9   :  { %56 = vst [vmem:[#allocation2 + $0x100] sm:$0xff] %v55_v7 }
   0xa   :  { %58 = vst [vmem:[#allocation2 + $0x300] sm:$0xff] %v57_v8 }
   0xb   :  { %60 = vst [vmem:[#allocation2 + $0x2f0] sm:$0xff] %v59_v9 }
   0xc   :  { %62 = vst [vmem:[#allocation2 + $0x290] sm:$0xff] %v61_v10 }
   0xd   :  { %64 = vst [vmem:[#allocation2 + $0x380] sm:$0xff] %v63_v11 }
   0xe   :  { %66 = vst [vmem:[#allocation2 + $0x48] sm:$0xff] %v65_v12 }
   0xf   :  { %68 = vst [vmem:[#allocation2 + $0xc0] sm:$0xff] %v67_v13 }
  0x10   :  { %70 = vst [vmem:[#allocation2 + $0x30] sm:$0xff] %v69_v14 }
  0x11   :  { %72 = vst [vmem:[#allocation2 + $0x148] sm:$0xff] %v71_v15 }
  0x12   :  { %74 = vst [vmem:[#allocation2 + $0x208] sm:$0xff] %v73_v16 }
  0x13   :  { %76 = vst [vmem:[#allocation2 + $0x88] sm:$0xff] %v75_v17 }
  0x14   :  { %78 = vst [vmem:[#allocation2 + $0x348] sm:$0xff] %v77_v18 }
  0x15   :  { %80 = vst [vmem:[#allocation2 + $0xe0] sm:$0xff] %v79_v19 }
  0x16   :  { %82 = vst [vmem:[#allocation2 + $0x368] sm:$0xff] %v81_v20 }
  0x17   :  { %84 = vst [vmem:[#allocation2 + $0x3e0] sm:$0xff] %v83_v21 }
  0x18   :  { %86 = vst [vmem:[#allocation2 + $0x1a8] sm:$0xff] %v85_v22 }
  0x19   :  { %88 = vst [vmem:[#allocation2 + $0x450] sm:$0xff] %v87_v23 }
  0x1a   :  { %94 = vsyncadd [#allocation4], 3072  ;;  %v2539_v24 = vld [vmem:[%s4351_s8 + $0xc0] sm:$0xff]  ;;  %v2540_v25 = vld [vmem:[%s4351_s8 + $0xc8] sm:$0xff] }
  0x1b   :  { %109 = vst [vmem:[#allocation2 + $0x420] sm:$0xff] %v2539_v24  ;;  %v2541_v26 = vld [vmem:[%s4351_s8 + $0xd0] sm:$0xff]  ;;  %v2542_v27 = vld [vmem:[%s4351_s8 + $0xd8] sm:$0xff]  ;;  %v2543_v28 = vld [vmem:[%s4351_s8 + $0xe0] sm:$0xff] }
  0x1c   :  { %111 = vst [vmem:[#allocation2 + $0x398] sm:$0xff] %v2540_v25  ;;  %v2544_v29 = vld [vmem:[%s4351_s8 + $0xe8] sm:$0xff]  ;;  %v2545_v30 = vld [vmem:[%s4351_s8 + $0xf0] sm:$0xff]  ;;  %v2546_v31 = vld [vmem:[%s4351_s8 + $0xf8] sm:$0xff] }
  0x1d   :  { %113 = vst [vmem:[#allocation2 + $0x350] sm:$0xff] %v2541_v26  ;;  %v2547_v32 = vld [vmem:[%s4351_s8 + $0x100] sm:$0xff]  ;;  %v2548_v33 = vld [vmem:[%s4351_s8 + $0x108] sm:$0xff]  ;;  %v2549_v34 = vld [vmem:[%s4351_s8 + $0x110] sm:$0xff] }
  0x1e   :  { %115 = vst [vmem:[#allocation2 + $0xc8] sm:$0xff] %v2542_v27  ;;  %v2550_v35 = vld [vmem:[%s4351_s8 + $0x118] sm:$0xff]  ;;  %v2551_v36 = vld [vmem:[%s4351_s8 + $0x120] sm:$0xff]  ;;  %v2552_v37 = vld [vmem:[%s4351_s8 + $0x128] sm:$0xff] }
  0x1f   :  { %117 = vst [vmem:[#allocation2 + $0x240] sm:$0xff] %v2543_v28  ;;  %v2553_v38 = vld [vmem:[%s4351_s8 + $0x130] sm:$0xff]  ;;  %v2554_v39 = vld [vmem:[%s4351_s8 + $0x138] sm:$0xff]  ;;  %v2555_v40 = vld [vmem:[%s4351_s8 + $0x140] sm:$0xff] }
  0x20   :  { %119 = vst [vmem:[#allocation2 + $0x390] sm:$0xff] %v2544_v29  ;;  %v2556_v41 = vld [vmem:[%s4351_s8 + $0x148] sm:$0xff]  ;;  %v2557_v42 = vld [vmem:[%s4351_s8 + $0x150] sm:$0xff]  ;;  %v2558_v43 = vld [vmem:[%s4351_s8 + $0x158] sm:$0xff] }
  0x21   :  { %121 = vst [vmem:[#allocation2 + $0x458] sm:$0xff] %v2545_v30  ;;  %v2559_v44 = vld [vmem:[%s4351_s8 + $0x160] sm:$0xff]  ;;  %v2560_v45 = vld [vmem:[%s4351_s8 + $0x168] sm:$0xff]  ;;  %v2561_v46 = vld [vmem:[%s4351_s8 + $0x170] sm:$0xff] }
  0x22   :  { %123 = vst [vmem:[#allocation2 + $0x68] sm:$0xff] %v2546_v31  ;;  %v2562_v47 = vld [vmem:[%s4351_s8 + $0x178] sm:$0xff] }
  0x23   :  { %125 = vst [vmem:[#allocation2 + $0x470] sm:$0xff] %v2547_v32 }
  0x24   :  { %127 = vst [vmem:[#allocation2 + $0x298] sm:$0xff] %v2548_v33 }
  0x25   :  { %129 = vst [vmem:[#allocation2 + $0x278] sm:$0xff] %v2549_v34 }
  0x26   :  { %131 = vst [vmem:[#allocation2 + $0x170] sm:$0xff] %v2550_v35 }
  0x27   :  { %133 = vst [vmem:[#allocation2 + $0x198] sm:$0xff] %v2551_v36 }
  0x28   :  { %135 = vst [vmem:[#allocation2 + $0xb0] sm:$0xff] %v2552_v37 }
  0x29   :  { %137 = vst [vmem:[#allocation2 + $0x20] sm:$0xff] %v2553_v38 }
  0x2a   :  { %139 = vst [vmem:[#allocation2 + $0x1e8] sm:$0xff] %v2554_v39 }
  0x2b   :  { %141 = vst [vmem:[#allocation2 + $0x1f8] sm:$0xff] %v2555_v40 }
  0x2c   :  { %143 = vst [vmem:[#allocation2 + $0x60] sm:$0xff] %v2556_v41 }
  0x2d   :  { %145 = vst [vmem:[#allocation2 + $0x3c8] sm:$0xff] %v2557_v42 }
  0x2e   :  { %147 = vst [vmem:[#allocation2 + $0x18] sm:$0xff] %v2558_v43 }
  0x2f   :  { %149 = vst [vmem:[#allocation2 + $0xa0] sm:$0xff] %v2559_v44 }
  0x30   :  { %151 = vst [vmem:[#allocation2 + $0x1d0] sm:$0xff] %v2560_v45 }
  0x31   :  { %153 = vst [vmem:[#allocation2 + $0x258] sm:$0xff] %v2561_v46 }
  0x32   :  { %155 = vst [vmem:[#allocation2 + $0xd0] sm:$0xff] %v2562_v47 }
  0x33   :  { %161 = vsyncadd [#allocation4 + $0x1], 3072  ;;  %v2563_v48 = vld [vmem:[%s4351_s8 + $0x180] sm:$0xff]  ;;  %v2564_v49 = vld [vmem:[%s4351_s8 + $0x188] sm:$0xff] }
  0x34   :  { %176 = vst [vmem:[#allocation2 + $0x408] sm:$0xff] %v2563_v48  ;;  %v2565_v50 = vld [vmem:[%s4351_s8 + $0x190] sm:$0xff]  ;;  %v2566_v51 = vld [vmem:[%s4351_s8 + $0x198] sm:$0xff]  ;;  %v2567_v52 = vld [vmem:[%s4351_s8 + $0x1a0] sm:$0xff] }
  0x35   :  { %178 = vst [vmem:[#allocation2 + $0x2c0] sm:$0xff] %v2564_v49  ;;  %v2568_v53 = vld [vmem:[%s4351_s8 + $0x1a8] sm:$0xff]  ;;  %v2569_v54 = vld [vmem:[%s4351_s8 + $0x1b0] sm:$0xff]  ;;  %v2570_v55 = vld [vmem:[%s4351_s8 + $0x1b8] sm:$0xff] }
  0x36   :  { %180 = vst [vmem:[#allocation2 + $0x3f8] sm:$0xff] %v2565_v50  ;;  %v2571_v56 = vld [vmem:[%s4351_s8 + $0x1c0] sm:$0xff]  ;;  %v2572_v57 = vld [vmem:[%s4351_s8 + $0x1c8] sm:$0xff]  ;;  %v2573_v58 = vld [vmem:[%s4351_s8 + $0x1d0] sm:$0xff] }
  0x37   :  { %182 = vst [vmem:[#allocation2 + $0x3f0] sm:$0xff] %v2566_v51  ;;  %v2574_v59 = vld [vmem:[%s4351_s8 + $0x1d8] sm:$0xff]  ;;  %v2575_v60 = vld [vmem:[%s4351_s8 + $0x1e0] sm:$0xff]  ;;  %v2576_v61 = vld [vmem:[%s4351_s8 + $0x1e8] sm:$0xff] }
  0x38   :  { %184 = vst [vmem:[#allocation2 + $0x338] sm:$0xff] %v2567_v52  ;;  %v2577_v62 = vld [vmem:[%s4351_s8 + $0x1f0] sm:$0xff]  ;;  %v2578_v63 = vld [vmem:[%s4351_s8 + $0x1f8] sm:$0xff]  ;;  %v2579_v0 = vld [vmem:[%s4351_s8 + $0x200] sm:$0xff] }
  0x39   :  { %186 = vst [vmem:[#allocation2 + $0x248] sm:$0xff] %v2568_v53  ;;  %v2580_v1 = vld [vmem:[%s4351_s8 + $0x208] sm:$0xff]  ;;  %v2581_v2 = vld [vmem:[%s4351_s8 + $0x210] sm:$0xff]  ;;  %v2582_v3 = vld [vmem:[%s4351_s8 + $0x218] sm:$0xff] }
  0x3a   :  { %188 = vst [vmem:[#allocation2 + $0x330] sm:$0xff] %v2569_v54  ;;  %v2583_v4 = vld [vmem:[%s4351_s8 + $0x220] sm:$0xff]  ;;  %v2584_v5 = vld [vmem:[%s4351_s8 + $0x228] sm:$0xff]  ;;  %v2585_v6 = vld [vmem:[%s4351_s8 + $0x230] sm:$0xff] }
  0x3b   :  { %190 = vst [vmem:[#allocation2 + $0x220] sm:$0xff] %v2570_v55  ;;  %v2586_v7 = vld [vmem:[%s4351_s8 + $0x238] sm:$0xff] }
  0x3c   :  { %192 = vst [vmem:[#allocation2 + $0x1b8] sm:$0xff] %v2571_v56 }
  0x3d   :  { %194 = vst [vmem:[#allocation2 + $0x310] sm:$0xff] %v2572_v57 }
  0x3e   :  { %196 = vst [vmem:[#allocation2 + $0x280] sm:$0xff] %v2573_v58 }
  0x3f   :  { %198 = vst [vmem:[#allocation2 + $0x288] sm:$0xff] %v2574_v59 }
  0x40   :  { %200 = vst [vmem:[#allocation2 + $0x2e8] sm:$0xff] %v2575_v60 }
  0x41   :  { %202 = vst [vmem:[#allocation2 + $0x120] sm:$0xff] %v2576_v61 }
  0x42   :  { %204 = vst [vmem:[#allocation2 + $0x2c8] sm:$0xff] %v2577_v62 }
  0x43   :  { %206 = vst [vmem:[#allocation2 + $0x3c0] sm:$0xff] %v2578_v63 }
  0x44   :  { %208 = vst [vmem:[#allocation2 + $0x418] sm:$0xff] %v2579_v0 }
  0x45   :  { %210 = vst [vmem:[#allocation2 + $0x70] sm:$0xff] %v2580_v1 }
  0x46   :  { %212 = vst [vmem:[#allocation2 + $0x270] sm:$0xff] %v2581_v2 }
  0x47   :  { %214 = vst [vmem:[#allocation2 + $0x200] sm:$0xff] %v2582_v3 }
  0x48   :  { %216 = vst [vmem:[#allocation2 + $0x1a0] sm:$0xff] %v2583_v4 }
  0x49   :  { %218 = vst [vmem:[#allocation2 + $0x140] sm:$0xff] %v2584_v5 }
  0x4a   :  { %220 = vst [vmem:[#allocation2 + $0x3a0] sm:$0xff] %v2585_v6 }
  0x4b   :  { %222 = vst [vmem:[#allocation2 + $0xf8] sm:$0xff] %v2586_v7 }
  0x4c   :  { %228 = vsyncadd [#allocation4 + $0x2], 3072  ;;  %v2587_v8 = vld [vmem:[%s4351_s8 + $0x240] sm:$0xff]  ;;  %v2588_v9 = vld [vmem:[%s4351_s8 + $0x248] sm:$0xff] }
  0x4d   :  { %243 = vst [vmem:[#allocation2 + $0x128] sm:$0xff] %v2587_v8  ;;  %v2589_v10 = vld [vmem:[%s4351_s8 + $0x250] sm:$0xff]  ;;  %v2590_v11 = vld [vmem:[%s4351_s8 + $0x258] sm:$0xff]  ;;  %v2591_v12 = vld [vmem:[%s4351_s8 + $0x260] sm:$0xff] }
  0x4e   :  { %245 = vst [vmem:[#allocation2 + $0x160] sm:$0xff] %v2588_v9  ;;  %v2592_v13 = vld [vmem:[%s4351_s8 + $0x268] sm:$0xff]  ;;  %v2593_v14 = vld [vmem:[%s4351_s8 + $0x270] sm:$0xff]  ;;  %v2594_v15 = vld [vmem:[%s4351_s8 + $0x278] sm:$0xff] }
  0x4f   :  { %247 = vst [vmem:[#allocation2 + $0x2a8] sm:$0xff] %v2589_v10  ;;  %v2595_v16 = vld [vmem:[%s4351_s8 + $0x280] sm:$0xff]  ;;  %v2596_v17 = vld [vmem:[%s4351_s8 + $0x288] sm:$0xff]  ;;  %v2597_v18 = vld [vmem:[%s4351_s8 + $0x290] sm:$0xff] }
  0x50   :  { %249 = vst [vmem:[#allocation2 + $0x130] sm:$0xff] %v2590_v11  ;;  %v2598_v19 = vld [vmem:[%s4351_s8 + $0x298] sm:$0xff]  ;;  %v2599_v20 = vld [vmem:[%s4351_s8 + $0x2a0] sm:$0xff]  ;;  %v2600_v21 = vld [vmem:[%s4351_s8 + $0x2a8] sm:$0xff] }
  0x51   :  { %251 = vst [vmem:[#allocation2 + $0x318] sm:$0xff] %v2591_v12  ;;  %v2601_v22 = vld [vmem:[%s4351_s8 + $0x2b0] sm:$0xff]  ;;  %v2602_v23 = vld [vmem:[%s4351_s8 + $0x2b8] sm:$0xff]  ;;  %v2603_v24 = vld [vmem:[%s4351_s8 + $0x2c0] sm:$0xff] }
  0x52   :  { %253 = vst [vmem:[#allocation2 + $0x268] sm:$0xff] %v2592_v13  ;;  %v2604_v25 = vld [vmem:[%s4351_s8 + $0x2c8] sm:$0xff]  ;;  %v2605_v26 = vld [vmem:[%s4351_s8 + $0x2d0] sm:$0xff]  ;;  %v2606_v27 = vld [vmem:[%s4351_s8 + $0x2d8] sm:$0xff] }
  0x53   :  { %255 = vst [vmem:[#allocation2 + $0x228] sm:$0xff] %v2593_v14  ;;  %v2607_v28 = vld [vmem:[%s4351_s8 + $0x2e0] sm:$0xff]  ;;  %v2608_v29 = vld [vmem:[%s4351_s8 + $0x2e8] sm:$0xff]  ;;  %v2609_v30 = vld [vmem:[%s4351_s8 + $0x2f0] sm:$0xff] }
  0x54   :  { %257 = vst [vmem:[#allocation2 + $0x410] sm:$0xff] %v2594_v15  ;;  %v2610_v31 = vld [vmem:[%s4351_s8 + $0x2f8] sm:$0xff] }
  0x55   :  { %259 = vst [vmem:[#allocation2 + $0x210] sm:$0xff] %v2595_v16 }
  0x56   :  { %261 = vst [vmem:[#allocation2 + $0x1c0] sm:$0xff] %v2596_v17 }
  0x57   :  { %263 = vst [vmem:[#allocation2 + $0x358] sm:$0xff] %v2597_v18 }
  0x58   :  { %265 = vst [vmem:[#allocation2 + $0x8] sm:$0xff] %v2598_v19 }
  0x59   :  { %267 = vst [vmem:[#allocation2 + $0x400] sm:$0xff] %v2599_v20 }
  0x5a   :  { %269 = vst [vmem:[#allocation2 + $0x1b0] sm:$0xff] %v2600_v21 }
  0x5b   :  { %271 = vst [vmem:[#allocation2 + $0x328] sm:$0xff] %v2601_v22 }
  0x5c   :  { %273 = vst [vmem:[#allocation2 + $0x230] sm:$0xff] %v2602_v23 }
  0x5d   :  { %275 = vst [vmem:[#allocation2 + $0xb8] sm:$0xff] %v2603_v24 }
  0x5e   :  { %277 = vst [vmem:[#allocation2 + $0x468] sm:$0xff] %v2604_v25 }
  0x5f   :  { %279 = vst [vmem:[#allocation2 + $0x2d0] sm:$0xff] %v2605_v26 }
  0x60   :  { %281 = vst [vmem:[#allocation2 + $0x78] sm:$0xff] %v2606_v27 }
  0x61   :  { %283 = vst [vmem:[#allocation2 + $0x2f8] sm:$0xff] %v2607_v28 }
  0x62   :  { %285 = vst [vmem:[#allocation2 + $0x218] sm:$0xff] %v2608_v29 }
  0x63   :  { %287 = vst [vmem:[#allocation2 + $0x1f0] sm:$0xff] %v2609_v30 }
  0x64   :  { %289 = vst [vmem:[#allocation2 + $0x178] sm:$0xff] %v2610_v31 }
  0x65   :  { %295 = vsyncadd [#allocation4 + $0x3], 3072  ;;  %v2611_v32 = vld [vmem:[%s4351_s8 + $0x300] sm:$0xff]  ;;  %v2612_v33 = vld [vmem:[%s4351_s8 + $0x308] sm:$0xff] }
  0x66   :  { %310 = vst [vmem:[#allocation2 + $0x110] sm:$0xff] %v2611_v32  ;;  %v2613_v34 = vld [vmem:[%s4351_s8 + $0x310] sm:$0xff]  ;;  %v2614_v35 = vld [vmem:[%s4351_s8 + $0x318] sm:$0xff]  ;;  %v2615_v36 = vld [vmem:[%s4351_s8 + $0x320] sm:$0xff] }
  0x67   :  { %312 = vst [vmem:[#allocation2 + $0x460] sm:$0xff] %v2612_v33  ;;  %v2616_v37 = vld [vmem:[%s4351_s8 + $0x328] sm:$0xff]  ;;  %v2617_v38 = vld [vmem:[%s4351_s8 + $0x330] sm:$0xff]  ;;  %v2618_v39 = vld [vmem:[%s4351_s8 + $0x338] sm:$0xff] }
  0x68   :  { %314 = vst [vmem:[#allocation2 + $0x2a0] sm:$0xff] %v2613_v34  ;;  %v2619_v40 = vld [vmem:[%s4351_s8 + $0x340] sm:$0xff]  ;;  %v2620_v41 = vld [vmem:[%s4351_s8 + $0x348] sm:$0xff]  ;;  %v2621_v42 = vld [vmem:[%s4351_s8 + $0x350] sm:$0xff] }
  0x69   :  { %316 = vst [vmem:[#allocation2 + $0x3d8] sm:$0xff] %v2614_v35  ;;  %v2622_v43 = vld [vmem:[%s4351_s8 + $0x358] sm:$0xff]  ;;  %v2623_v44 = vld [vmem:[%s4351_s8 + $0x360] sm:$0xff]  ;;  %v2624_v45 = vld [vmem:[%s4351_s8 + $0x368] sm:$0xff] }
  0x6a   :  { %318 = vst [vmem:[#allocation2 + $0xa8] sm:$0xff] %v2615_v36  ;;  %v2625_v46 = vld [vmem:[%s4351_s8 + $0x370] sm:$0xff]  ;;  %v2626_v47 = vld [vmem:[%s4351_s8 + $0x378] sm:$0xff]  ;;  %v2627_v48 = vld [vmem:[%s4351_s8 + $0x380] sm:$0xff] }
  0x6b   :  { %320 = vst [vmem:[#allocation2 + $0x1d8] sm:$0xff] %v2616_v37  ;;  %v2628_v49 = vld [vmem:[%s4351_s8 + $0x388] sm:$0xff]  ;;  %v2629_v50 = vld [vmem:[%s4351_s8 + $0x390] sm:$0xff]  ;;  %v2630_v51 = vld [vmem:[%s4351_s8 + $0x398] sm:$0xff] }
  0x6c   :  { %322 = vst [vmem:[#allocation2 + $0x118] sm:$0xff] %v2617_v38  ;;  %v2631_v52 = vld [vmem:[%s4351_s8 + $0x3a0] sm:$0xff]  ;;  %v2632_v53 = vld [vmem:[%s4351_s8 + $0x3a8] sm:$0xff]  ;;  %v2633_v54 = vld [vmem:[%s4351_s8 + $0x3b0] sm:$0xff] }
  0x6d   :  { %324 = vst [vmem:[#allocation2] sm:$0xff] %v2618_v39  ;;  %v2634_v55 = vld [vmem:[%s4351_s8 + $0x3b8] sm:$0xff] }
  0x6e   :  { %326 = vst [vmem:[#allocation2 + $0x478] sm:$0xff] %v2619_v40 }
  0x6f   :  { %328 = vst [vmem:[#allocation2 + $0x138] sm:$0xff] %v2620_v41 }
  0x70   :  { %330 = vst [vmem:[#allocation2 + $0xd8] sm:$0xff] %v2621_v42 }
  0x71   :  { %332 = vst [vmem:[#allocation2 + $0x2d8] sm:$0xff] %v2622_v43 }
  0x72   :  { %334 = vst [vmem:[#allocation2 + $0x260] sm:$0xff] %v2623_v44 }
  0x73   :  { %336 = vst [vmem:[#allocation2 + $0x3b8] sm:$0xff] %v2624_v45 }
  0x74   :  { %338 = vst [vmem:[#allocation2 + $0x180] sm:$0xff] %v2625_v46 }
  0x75   :  { %340 = vst [vmem:[#allocation2 + $0x28] sm:$0xff] %v2626_v47 }
  0x76   :  { %342 = vst [vmem:[#allocation2 + $0x108] sm:$0xff] %v2627_v48 }
  0x77   :  { %344 = vst [vmem:[#allocation2 + $0x378] sm:$0xff] %v2628_v49 }
  0x78   :  { %346 = vst [vmem:[#allocation2 + $0x440] sm:$0xff] %v2629_v50 }
  0x79   :  { %348 = vst [vmem:[#allocation2 + $0x158] sm:$0xff] %v2630_v51 }
  0x7a   :  { %350 = vst [vmem:[#allocation2 + $0x360] sm:$0xff] %v2631_v52 }
  0x7b   :  { %352 = vst [vmem:[#allocation2 + $0x50] sm:$0xff] %v2632_v53 }
  0x7c   :  { %354 = vst [vmem:[#allocation2 + $0x308] sm:$0xff] %v2633_v54 }
  0x7d   :  { %356 = vst [vmem:[#allocation2 + $0x340] sm:$0xff] %v2634_v55 }
  0x7e   :  { %362 = vsyncadd [#allocation4 + $0x4], 3072  ;;  %v2635_v56 = vld [vmem:[%s4351_s8 + $0x3c0] sm:$0xff]  ;;  %v2636_v57 = vld [vmem:[%s4351_s8 + $0x3c8] sm:$0xff] }
  0x7f   :  { %377 = vst [vmem:[#allocation2 + $0x2e0] sm:$0xff] %v2635_v56  ;;  %v2637_v58 = vld [vmem:[%s4351_s8 + $0x3d0] sm:$0xff]  ;;  %v2638_v59 = vld [vmem:[%s4351_s8 + $0x3d8] sm:$0xff]  ;;  %v2639_v60 = vld [vmem:[%s4351_s8 + $0x3e0] sm:$0xff] }
  0x80   :  { %379 = vst [vmem:[#allocation2 + $0x3e8] sm:$0xff] %v2636_v57  ;;  %v2640_v61 = vld [vmem:[%s4351_s8 + $0x3e8] sm:$0xff]  ;;  %v2641_v62 = vld [vmem:[%s4351_s8 + $0x3f0] sm:$0xff]  ;;  %v2642_v63 = vld [vmem:[%s4351_s8 + $0x3f8] sm:$0xff] }
  0x81   :  { %381 = vst [vmem:[#allocation2 + $0x250] sm:$0xff] %v2637_v58  ;;  %v2643_v0 = vld [vmem:[%s4351_s8 + $0x400] sm:$0xff]  ;;  %v2644_v1 = vld [vmem:[%s4351_s8 + $0x408] sm:$0xff]  ;;  %v2645_v2 = vld [vmem:[%s4351_s8 + $0x410] sm:$0xff] }
  0x82   :  { %383 = vst [vmem:[#allocation2 + $0x1c8] sm:$0xff] %v2638_v59  ;;  %v2646_v3 = vld [vmem:[%s4351_s8 + $0x418] sm:$0xff]  ;;  %v2647_v4 = vld [vmem:[%s4351_s8 + $0x420] sm:$0xff]  ;;  %v2648_v5 = vld [vmem:[%s4351_s8 + $0x428] sm:$0xff] }
  0x83   :  { %385 = vst [vmem:[#allocation2 + $0x190] sm:$0xff] %v2639_v60  ;;  %v2649_v6 = vld [vmem:[%s4351_s8 + $0x430] sm:$0xff]  ;;  %v2650_v7 = vld [vmem:[%s4351_s8 + $0x438] sm:$0xff]  ;;  %v2651_v8 = vld [vmem:[%s4351_s8 + $0x440] sm:$0xff] }
  0x84   :  { %387 = vst [vmem:[#allocation2 + $0x3d0] sm:$0xff] %v2640_v61  ;;  %v2652_v9 = vld [vmem:[%s4351_s8 + $0x448] sm:$0xff]  ;;  %v2653_v10 = vld [vmem:[%s4351_s8 + $0x450] sm:$0xff]  ;;  %v2654_v11 = vld [vmem:[%s4351_s8 + $0x458] sm:$0xff] }
  0x85   :  { %389 = vst [vmem:[#allocation2 + $0xe8] sm:$0xff] %v2641_v62  ;;  %v2655_v12 = vld [vmem:[%s4351_s8 + $0x460] sm:$0xff]  ;;  %v2656_v13 = vld [vmem:[%s4351_s8 + $0x468] sm:$0xff]  ;;  %v2657_v14 = vld [vmem:[%s4351_s8 + $0x470] sm:$0xff] }
  0x86   :  { %391 = vst [vmem:[#allocation2 + $0xf0] sm:$0xff] %v2642_v63  ;;  %v2658_v15 = vld [vmem:[%s4351_s8 + $0x478] sm:$0xff] }
  0x87   :  { %393 = vst [vmem:[#allocation2 + $0x168] sm:$0xff] %v2643_v0 }
  0x88   :  { %395 = vst [vmem:[#allocation2 + $0x90] sm:$0xff] %v2644_v1 }
  0x89   :  { %397 = vst [vmem:[#allocation2 + $0x1e0] sm:$0xff] %v2645_v2 }
  0x8a   :  { %399 = vst [vmem:[#allocation2 + $0x38] sm:$0xff] %v2646_v3 }
  0x8b   :  { %401 = vst [vmem:[#allocation2 + $0x388] sm:$0xff] %v2647_v4 }
  0x8c   :  { %403 = vst [vmem:[#allocation2 + $0x430] sm:$0xff] %v2648_v5 }
  0x8d   :  { %405 = vst [vmem:[#allocation2 + $0x80] sm:$0xff] %v2649_v6 }
  0x8e   :  { %407 = vst [vmem:[#allocation2 + $0x428] sm:$0xff] %v2650_v7 }
  0x8f   :  { %409 = vst [vmem:[#allocation2 + $0x238] sm:$0xff] %v2651_v8 }
  0x90   :  { %411 = vst [vmem:[#allocation2 + $0x2b8] sm:$0xff] %v2652_v9 }
  0x91   :  { %413 = vst [vmem:[#allocation2 + $0x40] sm:$0xff] %v2653_v10 }
  0x92   :  { %415 = vst [vmem:[#allocation2 + $0x150] sm:$0xff] %v2654_v11 }
  0x93   :  { %417 = vst [vmem:[#allocation2 + $0x3a8] sm:$0xff] %v2655_v12 }
  0x94   :  { %419 = vst [vmem:[#allocation2 + $0x98] sm:$0xff] %v2656_v13 }
  0x95   :  { %421 = vst [vmem:[#allocation2 + $0x58] sm:$0xff] %v2657_v14 }
  0x96   :  { %423 = vst [vmem:[#allocation2 + $0x188] sm:$0xff] %v2658_v15 }
  0x97   :  { %429 = vsyncadd [#allocation4 + $0x5], 3072  ;;  %v444_v16 = vld [vmem:[%s4343_s0 + $0x60] sm:$0xff]  ;;  %v446_v17 = vld [vmem:[%s4343_s0 + $0x70] sm:$0xff]  ;;  %v3493_v23 = vmov 0   ;;  %vm462_vm0 = vcmask 195584  }
  0x98   :  { %482 = vmatpush.msra.mxu1 %v444_v16  ;;  %528 = vmatpush.msra.mxu2 %v446_v17  ;;  %v438_v18 = vld [vmem:[%s4343_s0 + $0x30] sm:$0xff]  ;;  %v440_v19 = vld [vmem:[%s4343_s0 + $0x40] sm:$0xff]  ;;  %v447_v20 = vld [vmem:[%s4343_s0 + $0x78] sm:$0xff]  ;;  %vm626_vm1 = vcmask 130048   ;;  %vm763_vm2 = vcmask 1040384   ;;  %vm774_vm4 = vcmask 1041409  }
  0x99   :  { %551 = vmatpush.msra.mxu3 %v447_v20  ;;  %v432_v21 = vld [vmem:[%s4343_s0] sm:$0xff]  ;;  %v434_v22 = vld [vmem:[%s4343_s0 + $0x10] sm:$0xff]  ;;  %3451 = vset.pattern.permute.xlu0 %v3493_v23  ;;  %v441_v25 = vld [vmem:[%s4343_s0 + $0x48] sm:$0xff]  ;;  %vm808_vm3 = vsmask.f32 256  ;;  %vm767_vm7 = vcmask 1042434  }
  0x9a   :  { %483 = vmatpush.msra.mxu1 %v438_v18  ;;  %529 = vmatpush.msra.mxu2 %v440_v19  ;;  %v430_v24 = vld [vmem:[%s4344_s1] sm:$0xff]  ;;  %v435_v27 = vld [vmem:[%s4343_s0 + $0x18] sm:$0xff]  ;;  %v451_v28 = vld [vmem:[%s4345_s2 + $0x8] sm:$0xff]  ;;  %vm811_vm5 = vsmask.f32 1280  ;;  %vm776_vm9 = vcmask 1043459  }
  0x9b   :  { %v448_v26 = vld [vmem:[%s4343_s0 + $0x80] sm:$0xff]  ;;  %552 = vmatpush.msra.mxu3 %v441_v25  ;;  %v442_v29 = vld [vmem:[%s4343_s0 + $0x50] sm:$0xff]  ;;  %v445_v30 = vld [vmem:[%s4343_s0 + $0x68] sm:$0xff]  ;;  %459 = vperm.xlu0 %3451, %v451_v28   ;;  %vm783_vm10 = vcmask 1044484   ;;  %vm815_vm11 = vsmask.f32 2304 }
  0x9c   :  { %574 = vmatpush.msra.mxu0 %v448_v26  ;;  %484 = vmatpush.msra.mxu1 %v432_v21  ;;  %v436_v31 = vld [vmem:[%s4343_s0 + $0x20] sm:$0xff]  ;;  %v439_v32 = vld [vmem:[%s4343_s0 + $0x38] sm:$0xff]  ;;  %v433_v33 = vld [vmem:[%s4343_s0 + $0x8] sm:$0xff]  ;;  %vm771_vm12 = vcmask 1041408   ;;  %vm778_vm13 = vcmask 1042433   ;;  %vm4353_vm14 = vcmask 1043458  }
  0x9d   :  { %530 = vmatpush.msra.mxu2 %v434_v22  ;;  %2659 = vmatmul.msk.f32.vlgmr.msra.gmra.mxu1 %vm462_vm0, %v430_v24  ;;  %v431_v34 = vld [vmem:[%s4344_s1 + $0x8] sm:$0xff]  ;;  %v450_v35 = vld [vmem:[%s4345_s2] sm:$0xff]  ;;  %v443_v37 = vld [vmem:[%s4343_s0 + $0x58] sm:$0xff] }
  0x9e   :  { %2663 = vmatmul.msk.f32.vlgmr.msra.gmra.mxu2 %vm462_vm0, %v430_v24  ;;  %553 = vmatpush.msra.mxu3 %v435_v27  ;;  %v449_v36 = vld [vmem:[%s4343_s0 + $0x88] sm:$0xff]  ;;  %v619_v52 = vld [vmem:[%s4346_s3] sm:$0x3f]  ;;  %vm4068_vm6 = vmand %vm763_vm2, %vm808_vm3  ;;  %vm881_vm3 = vsmask.f32 7942 }
  0x9f   :  { %2665 = vmatmul.msk.f32.vlgmr.msra.gmra.mxu3 %vm462_vm0, %v430_v24  ;;  %575 = vmatpush.msra.mxu0 %v442_v29  ;;  %v437_v38 = vld [vmem:[%s4343_s0 + $0x28] sm:$0xff]  ;;  %v620_v53 = vld [vmem:[%s4347_s4] sm:$0x3f]  ;;  %vm4073_vm8 = vmand %vm774_vm4, %vm811_vm5  ;;  %vm884_vm5 = vsmask.f32 7946 }
  0xa0   :  { %505 = vmatpush.msrb.mxu1 %v445_v30  ;;  %3452 = vset.pattern.permute.xlu1 %v3493_v23  ;;  %vm813_vm15 = vmor %vm4073_vm8, %vm4068_vm6 }
  0xa1   :  { %576 = vmatpush.msra.mxu0 %v436_v31  ;;  %623 = vperm.xlu1 %3452, %v620_v53   ;;  %v818_v53 = vld [vmem:[#allocation3] sm:$0x7]  ;;  %vm4114_vm6 = vmand %vm774_vm4, %vm881_vm3 }
  0xa2   :  { %2667 = vmatmul.msk.f32.vlgmr.msra.gmra.mxu0 %vm462_vm0, %v430_v24  ;;  %506 = vmatpush.msrb.mxu1 %v439_v32 }
  0xa3   :  { %454 = vperm.xlu0 %3451, %v450_v35  }
  0xa4   :  { %507 = vmatpush.msrb.mxu1 %v433_v33 }
  0xa5   :  { %2660 = vmatmul.msk.f32.gmra.mxu1 %vm462_vm0, %v431_v34 }
  0xa6   :  { %2664 = vmatmul.msk.f32.gmra.mxu2 %vm462_vm0, %v431_v34  ;;  %597 = vmatpush.msra.mxu1 %v449_v36 }
  0xa7   :  { %2666 = vmatmul.msk.f32.gmra.mxu3 %vm462_vm0, %v431_v34 }
  0xa8   :  { %598 = vmatpush.msra.mxu1 %v443_v37 }
  0xaa   :  { %2668 = vmatmul.msk.f32.gmra.mxu0 %vm462_vm0, %v431_v34  ;;  %599 = vmatpush.msra.mxu1 %v437_v38 }
  0xad   :  { %2661 = vmatmul.msk.f32.vlgmr.msrb.gmra.mxu1 %vm462_vm0, %v430_v24 }
  0xb5   :  { %2662 = vmatmul.msk.f32.gmra.mxu1 %vm462_vm0, %v431_v34 }
  0xbd   :  { %2669 = vmatmul.msk.f32.vlgmr.msra.gmra.mxu1 %vm462_vm0, %v430_v24 }
  0xc5   :  { %2670 = vmatmul.msk.f32.gmra.mxu1 %vm462_vm0, %v431_v34  ;;  %vm4085_vm0 = vmand %vm767_vm7, %vm815_vm11 }
  0xc6   :  { %vm4102_vm11 = vmor %vm4085_vm0, %vm813_vm15  ;;  %vm4368_vm0 = vcmask 1043458  }
  0xc7   :  { %vm4136_vm15 = vmand %vm767_vm7, %vm884_vm5 }
 0x10d   :  { %v460_v39 = vpop.permute.xlu0 %459 }
 0x113   :  { %v624_v16 = vpop.permute.xlu1 %623 }
 0x115   :  { %v455_v42 = vpop.permute.xlu0 %454 }
 0x11a   :  { %v486_v40 = vpop.f32.mrf.mxu1 }
 0x11b   :  { %v487_v45 = vadd.f32 %v486_v40, %v455_v42 }
 0x11d   :  { %v607_v49 = vmax.f32 %v487_v45, 0.0 }
 0x11f   :  { %v578_v41 = vpop.f32.mrf.mxu0 }
 0x120   :  { %v579_v48 = vadd.f32 %v578_v41, %v455_v42 }
 0x121   :  { %v532_v43 = vpop.f32.mrf.mxu2 }
 0x122   :  { %v489_v44 = vpop.f32.mrf.mxu1  ;;  %v555_v50 = vpop.f32.mrf.mxu3  ;;  %v533_v56 = vadd.f32 %v532_v43, %v455_v42  ;;  %v611_v58 = vmax.f32 %v579_v48, 0.0 }
 0x123   :  { %v490_v46 = vadd.f32 %v489_v44, %v460_v39  ;;  %v556_v5 = vadd.f32 %v555_v50, %v455_v42 }
 0x124   :  { %v609_v62 = vmax.f32 %v533_v56, 0.0 }
 0x125   :  { %v613_v47 = vmax.f32 %v490_v46, 0.0  ;;  %v610_v8 = vmax.f32 %v556_v5, 0.0  ;;  %v833_v5 = vld [vmem:[#allocation3 + $0xf] sm:$0x7] }
 0x127   :  { %644 = vmatpush.msrb.mxu2 %v613_v47  ;;  %v581_v51 = vpop.f32.mrf.mxu0 }
 0x128   :  { %v582_v55 = vadd.f32 %v581_v51, %v460_v39 }
 0x129   :  { %v535_v54 = vpop.f32.mrf.mxu2  ;;  %645 = vmatpush.msrb.mxu2 %v607_v49 }
 0x12a   :  { %v536_v57 = vadd.f32 %v535_v54, %v460_v39  ;;  %v617_v59 = vmax.f32 %v582_v55, 0.0  ;;  %v509_v60 = vpop.f32.mrf.mxu1  ;;  %2671 = vmatmul.msk.f32.vlgmr.msrb.gmra.mxu2 %vm626_vm1, %v619_v52  ;;  %v558_v63 = vpop.f32.mrf.mxu3  ;;  %v821_v54 = vld [vmem:[#allocation3 + $0x3] sm:$0x7]  ;;  %v824_v55 = vld [vmem:[#allocation3 + $0x6] sm:$0x7] }
 0x12b   :  { %v510_v1 = vadd.f32 %v509_v60, %v455_v42  ;;  %v559_v3 = vadd.f32 %v558_v63, %v460_v39 }
 0x12c   :  { %v615_v61 = vmax.f32 %v536_v57, 0.0  ;;  %724 = vmatpush.msrb.mxu0 %v617_v59 }
 0x12d   :  { %v608_v6 = vmax.f32 %v510_v1, 0.0  ;;  %v616_v7 = vmax.f32 %v559_v3, 0.0 }
 0x12e   :  { %684 = vmatpush.msra.mxu2 %v615_v61  ;;  %725 = vmatpush.msrb.mxu0 %v611_v58 }
 0x12f   :  { %2675 = vmatmul.msk.f32.vlgmr.msrb.gmra.mxu0 %vm626_vm1, %v619_v52 }
 0x130   :  { %685 = vmatpush.msra.mxu2 %v609_v62 }
 0x132   :  { %v512_v0 = vpop.f32.mrf.mxu1  ;;  %2673 = vmatmul.msk.f32.vlgmr.msra.gmra.mxu2 %vm626_vm1, %v619_v52 }
 0x133   :  { %v513_v2 = vadd.f32 %v512_v0, %v460_v39  ;;  %v830_v0 = vld [vmem:[#allocation3 + $0xc] sm:$0x7] }
 0x135   :  { %v614_v4 = vmax.f32 %v513_v2, 0.0 }
 0x137   :  { %664 = vmatpush.msrb.mxu3 %v614_v4  ;;  %v827_v4 = vld [vmem:[#allocation3 + $0x9] sm:$0x7] }
 0x139   :  { %665 = vmatpush.msrb.mxu3 %v608_v6 }
 0x13a   :  { %v601_v9 = vpop.f32.mrf.mxu1  ;;  %2672 = vmatmul.msk.f32.vlgmr.msrb.gmra.mxu3 %vm626_vm1, %v619_v52 }
 0x13b   :  { %704 = vmatpush.msra.mxu3 %v616_v7  ;;  %v602_v11 = vadd.f32 %v601_v9, %v455_v42 }
 0x13d   :  { %705 = vmatpush.msra.mxu3 %v610_v8  ;;  %v612_v14 = vmax.f32 %v602_v11, 0.0 }
 0x142   :  { %v604_v10 = vpop.f32.mrf.mxu1  ;;  %2674 = vmatmul.msk.f32.vlgmr.msra.gmra.mxu3 %vm626_vm1, %v619_v52 }
 0x143   :  { %v605_v12 = vadd.f32 %v604_v10, %v460_v39 }
 0x145   :  { %v618_v13 = vmax.f32 %v605_v12, 0.0 }
 0x147   :  { %744 = vmatpush.msrb.mxu1 %v618_v13 }
 0x149   :  { %745 = vmatpush.msrb.mxu1 %v612_v14 }
 0x14a   :  { %2676 = vmatmul.msk.f32.vlgmr.msrb.gmra.mxu1 %vm626_vm1, %v619_v52  ;;  %vm879_vm1 = vsmask.f32 7938 }
 0x1ac   :  { %v727_v31 = vpop.f32.mrf.mxu0 }
 0x1ad   :  { %v647_v15 = vpop.f32.mrf.mxu2  ;;  %v728_v38 = vadd.f32 %v727_v31, %v624_v16 }
 0x1ae   :  { %v648_v20 = vadd.f32 %v647_v15, %v624_v16 }
 0x1af   :  { %v754_v57 = vmax.f32 %v728_v38, 0.0 }
 0x1b0   :  { %v750_v24 = vmax.f32 %v648_v20, 0.0 }
 0x1b5   :  { %v687_v17 = vpop.f32.mrf.mxu2 }
 0x1b6   :  { %v688_v18 = vadd.f32 %v687_v17, %v624_v16 }
 0x1b8   :  { %v752_v19 = vmax.f32 %v688_v18, 0.0 }
 0x1ba   :  { %v757_v21 = vpack.c.bf16 %v752_v19, %v752_v19 }
 0x1bc   :  { %v761_v27 = vrot.slane %v757_v21, 6  ;;  %v762_v28 = vrot.slane %v757_v21, 1 }
 0x1bd   :  { %v667_v22 = vpop.f32.mrf.mxu3 }
 0x1be   :  { %v668_v23 = vadd.f32 %v667_v22, %v624_v16  ;;  %v770_v33 = vsel %vm767_vm7, %v761_v27, %v762_v28  ;;  %v777_v34 = vsel %vm776_vm9, %v761_v27, %v762_v28  ;;  %v784_v35 = vsel %vm783_vm10, %v761_v27, %v762_v28 }
 0x1c0   :  { %v751_v25 = vmax.f32 %v668_v23, 0.0 }
 0x1c2   :  { %v756_v30 = vpack.c.bf16 %v751_v25, %v750_v24 }
 0x1c4   :  { %v760_v32 = vrot.slane %v756_v30, 3 }
 0x1c5   :  { %v707_v37 = vpop.f32.mrf.mxu3 }
 0x1c6   :  { %v766_v39 = vsel %vm763_vm2, %v756_v30, %v760_v32  ;;  %v775_v40 = vsel %vm774_vm4, %v756_v30, %v760_v32  ;;  %v782_v41 = vsel %vm767_vm7, %v756_v30, %v760_v32  ;;  %v708_v42 = vadd.f32 %v707_v37, %v624_v16 }
 0x1c7   :  { %v747_v43 = vpop.f32.mrf.mxu1  ;;  %v772_v44 = vsel %vm771_vm12, %v766_v39, %v770_v33  ;;  %v779_v45 = vsel %vm778_vm13, %v775_v40, %v777_v34  ;;  %v786_v46 = vsel %vm4353_vm14, %v782_v41, %v784_v35  ;;  %vm4108_vm14 = vmand %vm763_vm2, %vm879_vm1 }
 0x1c8   :  { %v748_v47 = vadd.f32 %v747_v43, %v624_v16  ;;  %v781_v49 = vrot.slane %v779_v45, 1  ;;  %v788_v50 = vrot.slane %v786_v46, 2  ;;  %v790_v51 = vunpack.i.h.s16 %v772_v44  ;;  %vm883_vm8 = vmor %vm4114_vm6, %vm4108_vm14 }
 0x1c9   :  { %v2677_v52 = vpack.i.b16 %v772_v44, %v772_v44  ;;  %v753_v56 = vmax.f32 %v708_v42, 0.0 }
 0x1ca   :  { %v755_v58 = vmax.f32 %v748_v47, 0.0  ;;  %v792_v60 = vunpack.i.h.s16 %v781_v49  ;;  %v794_v61 = vunpack.i.h.s16 %v788_v50  ;;  %v796_v62 = vpack.i.b16 %v790_v51, %v790_v51 }
 0x1cb   :  { %v2678_v63 = vpack.i.b16 %v781_v49, %v781_v49  ;;  %v2679_v2 = vpack.i.b16 %v788_v50, %v788_v50  ;;  %v819_v3 = vsel %vm4102_vm11, %v2677_v52, %v818_v53  ;;  %v836_v6 = vpack.c.bf16 %v754_v57, %v753_v56 }
 0x1cc   :  { %v837_v7 = vpack.c.bf16 %v755_v58, %v755_v58  ;;  %v798_v8 = vpack.i.b16 %v792_v60, %v792_v60  ;;  %v800_v9 = vpack.i.b16 %v794_v61, %v794_v61  ;;  %820 = vst [vmem:[#allocation3] sm:$0x7] %v819_v3  ;;  %v822_v10 = vsel %vm4102_vm11, %v796_v62, %v821_v54 }
 0x1cd   :  { %v825_v11 = vsel %vm4102_vm11, %v2678_v63, %v824_v55  ;;  %823 = vst [vmem:[#allocation3 + $0x3] sm:$0x7] %v822_v10  ;;  %v831_v12 = vsel %vm4102_vm11, %v2679_v2, %v830_v0  ;;  %v840_v13 = vrot.slane %v836_v6, 3 }
 0x1ce   :  { %v841_v14 = vrot.slane %v837_v7, 6  ;;  %v842_v15 = vrot.slane %v837_v7, 1  ;;  %826 = vst [vmem:[#allocation3 + $0x6] sm:$0x7] %v825_v11  ;;  %v828_v16 = vsel %vm4102_vm11, %v798_v8, %v827_v4  ;;  %v834_v17 = vsel %vm4102_vm11, %v800_v9, %v833_v5 }
 0x1cf   :  { %829 = vst [vmem:[#allocation3 + $0x9] sm:$0x7] %v828_v16  ;;  %v845_v19 = vsel %vm763_vm2, %v836_v6, %v840_v13  ;;  %v851_v20 = vsel %vm774_vm4, %v836_v6, %v840_v13  ;;  %v856_v22 = vsel %vm767_vm7, %v836_v6, %v840_v13  ;;  %vm4156_vm2 = vmor %vm4136_vm15, %vm883_vm8 }
 0x1d0   :  { %v848_v21 = vsel %vm767_vm7, %v841_v14, %v842_v15  ;;  %832 = vst [vmem:[#allocation3 + $0xc] sm:$0x7] %v831_v12  ;;  %v852_v24 = vsel %vm776_vm9, %v841_v14, %v842_v15  ;;  %v857_v25 = vsel %vm783_vm10, %v841_v14, %v842_v15 }
 0x1d1   :  { %v849_v23 = vsel %vm771_vm12, %v845_v19, %v848_v21  ;;  %835 = vst [vmem:[#allocation3 + $0xf] sm:$0x7] %v834_v17  ;;  %v853_v26 = vsel %vm778_vm13, %v851_v20, %v852_v24  ;;  %v858_v27 = vsel %vm4368_vm0, %v856_v22, %v857_v25 }
 0x1d2   :  { %v862_v28 = vunpack.i.h.s16 %v849_v23  ;;  %v2680_v29 = vpack.i.b16 %v849_v23, %v849_v23  ;;  %v855_v31 = vrot.slane %v853_v26, 1  ;;  %v860_v32 = vrot.slane %v858_v27, 2 }
 0x1d3   :  { %v887_v34 = vld [vmem:[#allocation3] sm:$0x7] }
 0x1d4   :  { %v868_v33 = vpack.i.b16 %v862_v28, %v862_v28  ;;  %v864_v35 = vunpack.i.h.s16 %v855_v31  ;;  %v866_v36 = vunpack.i.h.s16 %v860_v32  ;;  %v2681_v37 = vpack.i.b16 %v855_v31, %v855_v31  ;;  %v890_v39 = vld [vmem:[#allocation3 + $0x3] sm:$0x7] }
 0x1d5   :  { %v2682_v38 = vpack.i.b16 %v860_v32, %v860_v32  ;;  %v888_v40 = vsel %vm4156_vm2, %v2680_v29, %v887_v34  ;;  %v893_v42 = vld [vmem:[#allocation3 + $0x6] sm:$0x7] }
 0x1d6   :  { %v891_v41 = vsel %vm4156_vm2, %v868_v33, %v890_v39  ;;  %v870_v43 = vpack.i.b16 %v864_v35, %v864_v35  ;;  %v872_v44 = vpack.i.b16 %v866_v36, %v866_v36  ;;  %889 = vst [vmem:[#allocation3] sm:$0x7] %v888_v40  ;;  %v894_v45 = vsel %vm4156_vm2, %v2681_v37, %v893_v42  ;;  %v896_v46 = vld [vmem:[#allocation3 + $0x9] sm:$0x7] }
 0x1d7   :  { %892 = vst [vmem:[#allocation3 + $0x3] sm:$0x7] %v891_v41  ;;  %v899_v47 = vld [vmem:[#allocation3 + $0xc] sm:$0x7] }
 0x1d8   :  { %895 = vst [vmem:[#allocation3 + $0x6] sm:$0x7] %v894_v45  ;;  %v897_v48 = vsel %vm4156_vm2, %v870_v43, %v896_v46  ;;  %v900_v49 = vsel %vm4156_vm2, %v2682_v38, %v899_v47  ;;  %v902_v50 = vld [vmem:[#allocation3 + $0xf] sm:$0x7] }
 0x1d9   :  { %898 = vst [vmem:[#allocation3 + $0x9] sm:$0x7] %v897_v48  ;;  %v903_v51 = vsel %vm4156_vm2, %v872_v44, %v902_v50 }
 0x1da   :  { %901 = vst [vmem:[#allocation3 + $0xc] sm:$0x7] %v900_v49 }
 0x1db   :  { %904 = vst [vmem:[#allocation3 + $0xf] sm:$0x7] %v903_v51 }
 0x1dc   :  { %3479 = dma.done.wait [#allocation4], 3072 }
 0x1dd   :  { %3480 = vsyncadd [#allocation4], 4294964224  ;;  %v4172_v52 = vld [vmem:[#allocation3] sm:$0x7]  ;;  %v4174_v53 = vld [vmem:[#allocation2 + $0x2b0] sm:$0xf] }
 0x1de   :  { %v4176_v54 = vld [vmem:[#allocation2 + $0x2b0] sm:$0xf0]  ;;  %v4178_v55 = vld [vmem:[#allocation2 + $0x3b0] sm:$0xf]  ;;  %v4186_v59 = vld [vmem:[#allocation2 + $0x448] sm:$0xf] }
 0x1df   :  { %v4180_v56 = vld [vmem:[#allocation2 + $0x3b0] sm:$0xf0]  ;;  %v4182_v57 = vld [vmem:[#allocation2 + $0x10] sm:$0xf]  ;;  %v4188_v60 = vld [vmem:[#allocation2 + $0x448] sm:$0xf0] }
 0x1e0   :  { %v4184_v58 = vld [vmem:[#allocation2 + $0x10] sm:$0xf0]  ;;  %v4190_v61 = vld [vmem:[#allocation2 + $0x320] sm:$0xf]  ;;  %v3301_v62 = vld [vmem:[#allocation2 + $0x320] sm:$0xf0] }
 0x1e1   :  { %v2801_v63 = vld [vmem:[#allocation2 + $0x438] sm:$0xf]  ;;  %v3302_v0 = vld [vmem:[#allocation2 + $0x438] sm:$0xf0]  ;;  %v2805_v1 = vld [vmem:[#allocation2 + $0x370] sm:$0xf] }
 0x1e2   :  { %v3303_v2 = vld [vmem:[#allocation2 + $0x370] sm:$0xf0]  ;;  %v2809_v3 = vld [vmem:[#allocation2 + $0x100] sm:$0xf]  ;;  %v3304_v4 = vld [vmem:[#allocation2 + $0x100] sm:$0xf0] }
 0x1e3   :  { %v4192_v5 = vld [vmem:[#allocation2 + $0x300] sm:$0xf]  ;;  %v4194_v6 = vld [vmem:[#allocation2 + $0x300] sm:$0xf0]  ;;  %v4196_v7 = vld [vmem:[#allocation2 + $0x2f0] sm:$0xf] }
 0x1e4   :  { %v4198_v8 = vld [vmem:[#allocation2 + $0x2f0] sm:$0xf0]  ;;  %v4200_v9 = vld [vmem:[#allocation2 + $0x290] sm:$0xf]  ;;  %v4204_v11 = vld [vmem:[#allocation2 + $0x380] sm:$0xf] }
 0x1e5   :  { %v4202_v10 = vld [vmem:[#allocation2 + $0x290] sm:$0xf0]  ;;  %v4206_v12 = vld [vmem:[#allocation2 + $0x380] sm:$0xf0]  ;;  %v4208_v13 = vld [vmem:[#allocation2 + $0x48] sm:$0xf] }
 0x1e6   :  { %v4210_v14 = vld [vmem:[#allocation2 + $0x48] sm:$0xf0]  ;;  %v4212_v15 = vld [vmem:[#allocation2 + $0xc0] sm:$0xf]  ;;  %v4214_v16 = vld [vmem:[#allocation2 + $0xc0] sm:$0xf0] }
 0x1e7   :  { %v4216_v17 = vld [vmem:[#allocation2 + $0x30] sm:$0xf]  ;;  %v4218_v18 = vld [vmem:[#allocation2 + $0x30] sm:$0xf0]  ;;  %v4220_v19 = vld [vmem:[#allocation2 + $0x148] sm:$0xf] }
 0x1e8   :  { %v4222_v20 = vld [vmem:[#allocation2 + $0x148] sm:$0xf0]  ;;  %v4224_v21 = vld [vmem:[#allocation2 + $0x208] sm:$0xf]  ;;  %v4236_v27 = vld [vmem:[#allocation2 + $0xe0] sm:$0xf] }
 0x1e9   :  { %v4226_v22 = vld [vmem:[#allocation2 + $0x208] sm:$0xf0]  ;;  %v4228_v23 = vld [vmem:[#allocation2 + $0x88] sm:$0xf]  ;;  %v4238_v28 = vld [vmem:[#allocation2 + $0xe0] sm:$0xf0] }
 0x1ea   :  { %v4230_v24 = vld [vmem:[#allocation2 + $0x88] sm:$0xf0]  ;;  %v4232_v25 = vld [vmem:[#allocation2 + $0x348] sm:$0xf]  ;;  %v4244_v31 = vld [vmem:[#allocation2 + $0x3e0] sm:$0xf] }
 0x1eb   :  { %v4234_v26 = vld [vmem:[#allocation2 + $0x348] sm:$0xf0]  ;;  %v4240_v29 = vld [vmem:[#allocation2 + $0x368] sm:$0xf]  ;;  %v4246_v32 = vld [vmem:[#allocation2 + $0x3e0] sm:$0xf0] }
 0x1ec   :  { %v4242_v30 = vld [vmem:[#allocation2 + $0x368] sm:$0xf0]  ;;  %v4248_v33 = vld [vmem:[#allocation2 + $0x1a8] sm:$0xf]  ;;  %v4252_v35 = vld [vmem:[#allocation2 + $0x450] sm:$0xf] }
 0x1ed   :  { %v4250_v34 = vld [vmem:[#allocation2 + $0x1a8] sm:$0xf0]  ;;  %v4254_v36 = vld [vmem:[#allocation2 + $0x450] sm:$0xf0] }
 0x1ee   :  { %3481 = dma.done.wait [#allocation4 + $0x1], 3072 }
 0x1ef   :  { %3482 = vsyncadd [#allocation4 + $0x1], 4294964224  ;;  %v2810_v37 = vor.u32 %v3304_v4, %v2809_v3  ;;  %v2806_v38 = vor.u32 %v3303_v2, %v2805_v1  ;;  %v2802_v39 = vor.u32 %v3302_v0, %v2801_v63  ;;  %v3328_v40 = vld [vmem:[#allocation2 + $0x68] sm:$0xff]  ;;  %v3327_v42 = vld [vmem:[#allocation2 + $0x458] sm:$0xff]  ;;  %v2798_v44 = vor.u32 %v3301_v62, %v4190_v61 }
 0x1f0   :  { %v3336_v41 = vld [vmem:[#allocation2 + $0x1e8] sm:$0xff]  ;;  %1162 = vmatpush.bf16.msrb.mxu2 %v3328_v40  ;;  %v3335_v43 = vld [vmem:[#allocation2 + $0x20] sm:$0xff]  ;;  %v3344_v45 = vld [vmem:[#allocation2 + $0xd0] sm:$0xff]  ;;  %v2794_v50 = vor.u32 %v4188_v60, %v4186_v59  ;;  %v2790_v61 = vor.u32 %v4184_v58, %v4182_v57  ;;  %v2786_v59 = vor.u32 %v4180_v56, %v4178_v55  ;;  %v2782_v58 = vor.u32 %v4176_v54, %v4174_v53 }
 0x1f1   :  { %1353 = vmatpush.bf16.msra.mxu1 %v2810_v37  ;;  %1175 = vmatpush.bf16.msrb.mxu3 %v3336_v41  ;;  %v3326_v46 = vld [vmem:[#allocation2 + $0x390] sm:$0xff]  ;;  %v961_v48 = vld [vmem:[#allocation3 + $0x3] sm:$0x7]  ;;  %v3343_v49 = vld [vmem:[#allocation2 + $0x258] sm:$0xff]  ;;  %v2838_v54 = vor.u32 %v4218_v18, %v4216_v17  ;;  %v2830_v17 = vor.u32 %v4210_v14, %v4208_v13  ;;  %v2862_v18 = vor.u32 %v4242_v30, %v4240_v29 }
 0x1f2   :  { %v3334_v47 = vld [vmem:[#allocation2 + $0xb0] sm:$0xff]  ;;  %1188 = vmatpush.bf16.msra.mxu0 %v3344_v45  ;;  %1011 = vst [vmem:[#allocation1] ss:$9 sm:$0xff] %v961_v48  ;;  %v3325_v51 = vld [vmem:[#allocation2 + $0x240] sm:$0xff]  ;;  %v3333_v63 = vld [vmem:[#allocation2 + $0x198] sm:$0xff]  ;;  %v2854_v13 = vor.u32 %v4234_v26, %v4232_v25  ;;  %v2818_v14 = vor.u32 %v4198_v8, %v4196_v7  ;;  %v2850_v29 = vor.u32 %v4230_v24, %v4228_v23 }
 0x1f3   :  { %v3342_v0 = vld [vmem:[#allocation2 + $0x1d0] sm:$0xff]  ;;  %v3324_v62 = vld [vmem:[#allocation2 + $0xc8] sm:$0xff]  ;;  %v3341_v2 = vld [vmem:[#allocation2 + $0xa0] sm:$0xff] }
 0x1f4   :  { %1163 = vmatpush.bf16.msrb.mxu2 %v3327_v42  ;;  %v3332_v1 = vld [vmem:[#allocation2 + $0x170] sm:$0xff]  ;;  %v3340_v57 = vld [vmem:[#allocation2 + $0x18] sm:$0xff]  ;;  %v3339_v41 = vld [vmem:[#allocation2 + $0x3c8] sm:$0xff]  ;;  %v2842_v42 = vor.u32 %v4222_v20, %v4220_v19  ;;  %v2834_v19 = vor.u32 %v4214_v16, %v4212_v15  ;;  %v2866_v20 = vor.u32 %v4246_v32, %v4244_v31  ;;  %v2858_v15 = vor.u32 %v4238_v28, %v4236_v27 }
 0x1f5   :  { %1354 = vmatpush.bf16.msra.mxu1 %v2806_v38  ;;  %1176 = vmatpush.bf16.msrb.mxu3 %v3335_v43  ;;  %v3323_v37 = vld [vmem:[#allocation2 + $0x350] sm:$0xff]  ;;  %v3331_v38 = vld [vmem:[#allocation2 + $0x278] sm:$0xff]  ;;  %v2874_v43 = vor.u32 %v4254_v36, %v4252_v35  ;;  %v3338_v53 = vld [vmem:[#allocation2 + $0x60] sm:$0xff]  ;;  %v2822_v16 = vor.u32 %v4202_v10, %v4200_v9 }
 0x1f6   :  { %1189 = vmatpush.bf16.msra.mxu0 %v3343_v49  ;;  %v3330_v40 = vld [vmem:[#allocation2 + $0x298] sm:$0xff]  ;;  %v3329_v56 = vld [vmem:[#allocation2 + $0x470] sm:$0xff] }
 0x1f7   :  { %v3337_v45 = vld [vmem:[#allocation2 + $0x1f8] sm:$0xff] }
 0x1f8   :  { %1164 = vmatpush.bf16.msrb.mxu2 %v3326_v46 }
 0x1f9   :  { %1355 = vmatpush.bf16.msra.mxu1 %v2802_v39  ;;  %1177 = vmatpush.bf16.msrb.mxu3 %v3334_v47  ;;  %v1012_v3 = vld [vmem:[#allocation1] sm:$0xff]  ;;  %v1013_v4 = vld [vmem:[#allocation1 + $0x9] sm:$0xff]  ;;  %v1014_v60 = vld [vmem:[#allocation1 + $0x12] sm:$0xff] }
 0x1fa   :  { %1190 = vmatpush.bf16.msra.mxu0 %v3342_v0  ;;  %1202 = vst [vmem:[#allocation1] ss:$9 sm:$0xff] %v4172_v52  ;;  %v3322_v39 = vld [vmem:[#allocation2 + $0x398] sm:$0xff]  ;;  %v3321_v52 = vld [vmem:[#allocation2 + $0x420] sm:$0xff] }
 0x1fc   :  { %1165 = vmatpush.bf16.msrb.mxu2 %v3325_v51 }
 0x1fd   :  { %1356 = vmatpush.bf16.msra.mxu1 %v2798_v44  ;;  %1178 = vmatpush.bf16.msrb.mxu3 %v3333_v63  ;;  %v2870_v44 = vor.u32 %v4250_v34, %v4248_v33  ;;  %v2826_v33 = vor.u32 %v4206_v12, %v4204_v11  ;;  %v2814_v11 = vor.u32 %v4194_v6, %v4192_v5 }
 0x1fe   :  { %1191 = vmatpush.bf16.msra.mxu0 %v3341_v2  ;;  %v2846_v12 = vor.u32 %v4226_v22, %v4224_v21 }
 0x200   :  { %1166 = vmatpush.bf16.msrb.mxu2 %v3324_v62 }
 0x201   :  { %1357 = vmatpush.bf16.msra.mxu1 %v2794_v50  ;;  %1179 = vmatpush.bf16.msrb.mxu3 %v3332_v1  ;;  %v1203_v55 = vld [vmem:[#allocation1] sm:$0xff]  ;;  %v1204_v9 = vld [vmem:[#allocation1 + $0x9] sm:$0xff]  ;;  %v1205_v10 = vld [vmem:[#allocation1 + $0x12] sm:$0xff] }
 0x202   :  { %1192 = vmatpush.bf16.msra.mxu0 %v3340_v57 }
 0x204   :  { %1167 = vmatpush.bf16.msrb.mxu2 %v3323_v37 }
 0x205   :  { %1358 = vmatpush.bf16.msra.mxu1 %v2790_v61  ;;  %1180 = vmatpush.bf16.msrb.mxu3 %v3331_v38 }
 0x206   :  { %1193 = vmatpush.bf16.msra.mxu0 %v3339_v41 }
 0x208   :  { %1168 = vmatpush.bf16.msrb.mxu2 %v3322_v39 }
 0x209   :  { %1359 = vmatpush.bf16.msra.mxu1 %v2786_v59  ;;  %1181 = vmatpush.bf16.msrb.mxu3 %v3330_v40 }
 0x20a   :  { %1194 = vmatpush.bf16.msra.mxu0 %v3338_v53 }
 0x20c   :  { %1169 = vmatpush.bf16.msrb.mxu2 %v3321_v52 }
 0x20d   :  { %1360 = vmatpush.bf16.msra.mxu1 %v2782_v58  ;;  %1182 = vmatpush.bf16.msrb.mxu3 %v3329_v56 }
 0x20e   :  { %1195 = vmatpush.bf16.msra.mxu0 %v3337_v45 }
 0x20f   :  { %1170 = vmatmul.bf16.vlgmr.msrb.gmra.mxu2 %v1012_v3 }
 0x210   :  { %1361 = vmatmul.bf16.vlgmr.msra.gmra.mxu1 %v1203_v55  ;;  %1366 = vmatpush.bf16.msra.mxu2 %v2842_v42 }
 0x211   :  { %1379 = vmatpush.bf16.msra.mxu3 %v2874_v43  ;;  %1196 = vmatmul.bf16.vlgmr.msra.gmra.mxu0 %v1014_v60 }
 0x212   :  { %1183 = vmatmul.bf16.vlgmr.msrb.gmra.mxu3 %v1013_v4 }
 0x214   :  { %1367 = vmatpush.bf16.msra.mxu2 %v2838_v54 }
 0x215   :  { %1380 = vmatpush.bf16.msra.mxu3 %v2870_v44 }
 0x218   :  { %1368 = vmatpush.bf16.msra.mxu2 %v2834_v19 }
 0x219   :  { %1381 = vmatpush.bf16.msra.mxu3 %v2866_v20 }
 0x21c   :  { %1369 = vmatpush.bf16.msra.mxu2 %v2830_v17 }
 0x21d   :  { %1382 = vmatpush.bf16.msra.mxu3 %v2862_v18 }
 0x220   :  { %1370 = vmatpush.bf16.msra.mxu2 %v2826_v33 }
 0x221   :  { %1383 = vmatpush.bf16.msra.mxu3 %v2858_v15 }
 0x224   :  { %1371 = vmatpush.bf16.msra.mxu2 %v2822_v16 }
 0x225   :  { %1384 = vmatpush.bf16.msra.mxu3 %v2854_v13 }
 0x228   :  { %1372 = vmatpush.bf16.msra.mxu2 %v2818_v14 }
 0x229   :  { %1385 = vmatpush.bf16.msra.mxu3 %v2850_v29 }
 0x22c   :  { %1373 = vmatpush.bf16.msra.mxu2 %v2814_v11 }
 0x22d   :  { %1386 = vmatpush.bf16.msra.mxu3 %v2846_v12 }
 0x22f   :  { %1374 = vmatmul.bf16.vlgmr.msra.gmra.mxu2 %v1204_v9 }
 0x230   :  { %1387 = vmatmul.bf16.vlgmr.msra.gmra.mxu3 %v1205_v10 }
 0x28d   :  { %v1362_v25 = vpop.f32.mrf.mxu1 }
 0x28e   :  { %v1197_v27 = vpop.f32.mrf.mxu0 }
 0x292   :  { %v1171_v7 = vpop.f32.mrf.mxu2 }
 0x295   :  { %v1364_v26 = vpop.f32.mrf.mxu1  ;;  %v1184_v8 = vpop.f32.mrf.mxu3 }
 0x296   :  { %v1199_v28 = vpop.f32.mrf.mxu0  ;;  %v1185_v30 = vadd.f32 %v1184_v8, %v1171_v7 }
 0x298   :  { %v1198_v31 = vadd.f32 %v1197_v27, %v1185_v30 }
 0x29a   :  { %v1173_v23 = vpop.f32.mrf.mxu2  ;;  %v1363_v5 = vadd.f32 %v1362_v25, %v1198_v31 }
 0x29d   :  { %v1186_v24 = vpop.f32.mrf.mxu3 }
 0x2b2   :  { %v1375_v6 = vpop.f32.mrf.mxu2 }
 0x2b3   :  { %v1388_v32 = vpop.f32.mrf.mxu3  ;;  %v1376_v21 = vadd.f32 %v1375_v6, %v1363_v5 }
 0x2b5   :  { %v4298_v22 = vadd.f32 %v1388_v32, %v1376_v21 }
 0x2ba   :  { %v1377_v34 = vpop.f32.mrf.mxu2 }
 0x2bb   :  { %v1390_v35 = vpop.f32.mrf.mxu3 }
 0x2bc   :  { %3483 = dma.done.wait [#allocation4 + $0x2], 3072 }
 0x2bd   :  { %3484 = vsyncadd [#allocation4 + $0x2], 4294964224  ;;  %v3352_v36 = vld [vmem:[#allocation2 + $0x220] sm:$0xff]  ;;  %v3368_v47 = vld [vmem:[#allocation2 + $0xf8] sm:$0xff] }
 0x2be   :  { %v3360_v46 = vld [vmem:[#allocation2 + $0x3c0] sm:$0xff]  ;;  %1596 = vmatpush.bf16.msrb.mxu0 %v3352_v36  ;;  %v3351_v48 = vld [vmem:[#allocation2 + $0x330] sm:$0xff]  ;;  %v3359_v49 = vld [vmem:[#allocation2 + $0x2c8] sm:$0xff]  ;;  %1622 = vmatpush.bf16.msrb.mxu2 %v3368_v47 }
 0x2bf   :  { %1609 = vmatpush.bf16.msrb.mxu1 %v3360_v46  ;;  %v3367_v50 = vld [vmem:[#allocation2 + $0x3a0] sm:$0xff]  ;;  %v3350_v51 = vld [vmem:[#allocation2 + $0x248] sm:$0xff]  ;;  %v3349_v62 = vld [vmem:[#allocation2 + $0x338] sm:$0xff] }
 0x2c0   :  { %v3358_v63 = vld [vmem:[#allocation2 + $0x120] sm:$0xff]  ;;  %v3357_v1 = vld [vmem:[#allocation2 + $0x2e8] sm:$0xff]  ;;  %v3348_v3 = vld [vmem:[#allocation2 + $0x3f0] sm:$0xff] }
 0x2c1   :  { %v3366_v0 = vld [vmem:[#allocation2 + $0x140] sm:$0xff]  ;;  %v3356_v4 = vld [vmem:[#allocation2 + $0x288] sm:$0xff]  ;;  %v3347_v60 = vld [vmem:[#allocation2 + $0x3f8] sm:$0xff] }
 0x2c2   :  { %1597 = vmatpush.bf16.msrb.mxu0 %v3351_v48  ;;  %1623 = vmatpush.bf16.msrb.mxu2 %v3367_v50  ;;  %v1395_v61 = vld [vmem:[#allocation3 + $0x6] sm:$0x7]  ;;  %v3363_v38 = vld [vmem:[#allocation2 + $0x270] sm:$0xff]  ;;  %v3353_v41 = vld [vmem:[#allocation2 + $0x1b8] sm:$0xff] }
 0x2c3   :  { %1610 = vmatpush.bf16.msrb.mxu1 %v3359_v49  ;;  %1445 = vst [vmem:[#allocation1] ss:$9 sm:$0xff] %v1395_v61  ;;  %v3365_v2 = vld [vmem:[#allocation2 + $0x1a0] sm:$0xff]  ;;  %v3354_v58 = vld [vmem:[#allocation2 + $0x310] sm:$0xff]  ;;  %v3345_v40 = vld [vmem:[#allocation2 + $0x408] sm:$0xff] }
 0x2c4   :  { %v3364_v59 = vld [vmem:[#allocation2 + $0x200] sm:$0xff]  ;;  %v3362_v39 = vld [vmem:[#allocation2 + $0x70] sm:$0xff]  ;;  %v3361_v55 = vld [vmem:[#allocation2 + $0x418] sm:$0xff] }
 0x2c5   :  { %v3355_v37 = vld [vmem:[#allocation2 + $0x280] sm:$0xff] }
 0x2c6   :  { %1598 = vmatpush.bf16.msrb.mxu0 %v3350_v51  ;;  %1624 = vmatpush.bf16.msrb.mxu2 %v3366_v0  ;;  %v3346_v57 = vld [vmem:[#allocation2 + $0x2c0] sm:$0xff] }
 0x2c7   :  { %1611 = vmatpush.bf16.msrb.mxu1 %v3358_v63 }
 0x2ca   :  { %1599 = vmatpush.bf16.msrb.mxu0 %v3349_v62  ;;  %1625 = vmatpush.bf16.msrb.mxu2 %v3365_v2  ;;  %v1446_v52 = vld [vmem:[#allocation1] sm:$0xff]  ;;  %v1447_v56 = vld [vmem:[#allocation1 + $0x9] sm:$0xff]  ;;  %v1448_v42 = vld [vmem:[#allocation1 + $0x12] sm:$0xff] }
 0x2cb   :  { %1612 = vmatpush.bf16.msrb.mxu1 %v3357_v1 }
 0x2ce   :  { %1600 = vmatpush.bf16.msrb.mxu0 %v3348_v3  ;;  %1626 = vmatpush.bf16.msrb.mxu2 %v3364_v59 }
 0x2cf   :  { %1613 = vmatpush.bf16.msrb.mxu1 %v3356_v4 }
 0x2d2   :  { %1601 = vmatpush.bf16.msrb.mxu0 %v3347_v60  ;;  %1627 = vmatpush.bf16.msrb.mxu2 %v3363_v38 }
 0x2d3   :  { %1614 = vmatpush.bf16.msrb.mxu1 %v3355_v37 }
 0x2d6   :  { %1602 = vmatpush.bf16.msrb.mxu0 %v3346_v57  ;;  %1628 = vmatpush.bf16.msrb.mxu2 %v3362_v39 }
 0x2d7   :  { %1615 = vmatpush.bf16.msrb.mxu1 %v3354_v58 }
 0x2da   :  { %1603 = vmatpush.bf16.msrb.mxu0 %v3345_v40  ;;  %1629 = vmatpush.bf16.msrb.mxu2 %v3361_v55 }
 0x2db   :  { %1616 = vmatpush.bf16.msrb.mxu1 %v3353_v41 }
 0x2dd   :  { %1604 = vmatmul.bf16.vlgmr.msrb.gmra.mxu0 %v1446_v52  ;;  %1630 = vmatmul.bf16.vlgmr.msrb.gmra.mxu2 %v1448_v42 }
 0x2de   :  { %1617 = vmatmul.bf16.vlgmr.msrb.gmra.mxu1 %v1447_v56 }
 0x35a   :  { %v1605_v43 = vpop.f32.mrf.mxu0 }
 0x35b   :  { %v1618_v53 = vpop.f32.mrf.mxu1 }
 0x35c   :  { %v1619_v54 = vadd.f32 %v1618_v53, %v1605_v43 }
 0x360   :  { %v1631_v44 = vpop.f32.mrf.mxu2 }
 0x361   :  { %v1632_v45 = vadd.f32 %v1631_v44, %v1619_v54 }
 0x362   :  { %v1607_v19 = vpop.f32.mrf.mxu0 }
 0x363   :  { %v1620_v20 = vpop.f32.mrf.mxu1  ;;  %v4301_v17 = vadd.f32 %v1632_v45, %v4298_v22 }
 0x368   :  { %v1633_v18 = vpop.f32.mrf.mxu2 }
 0x369   :  { %3485 = dma.done.wait [#allocation4 + $0x3], 3072 }
 0x36a   :  { %3486 = vsyncadd [#allocation4 + $0x3], 4294964224  ;;  %v3376_v33 = vld [vmem:[#allocation2 + $0x410] sm:$0xff]  ;;  %v3392_v16 = vld [vmem:[#allocation2 + $0x178] sm:$0xff] }
 0x36b   :  { %v3384_v15 = vld [vmem:[#allocation2 + $0x230] sm:$0xff]  ;;  %1840 = vmatpush.bf16.msrb.mxu3 %v3376_v33  ;;  %v3375_v13 = vld [vmem:[#allocation2 + $0x228] sm:$0xff]  ;;  %1866 = vmatpush.bf16.msra.mxu1 %v3392_v16  ;;  %v3390_v9 = vld [vmem:[#allocation2 + $0x218] sm:$0xff] }
 0x36c   :  { %1853 = vmatpush.bf16.msra.mxu0 %v3384_v15  ;;  %v3383_v14 = vld [vmem:[#allocation2 + $0x328] sm:$0xff]  ;;  %v3391_v29 = vld [vmem:[#allocation2 + $0x1f0] sm:$0xff]  ;;  %v3373_v25 = vld [vmem:[#allocation2 + $0x318] sm:$0xff] }
 0x36d   :  { %v3374_v11 = vld [vmem:[#allocation2 + $0x268] sm:$0xff]  ;;  %v3382_v12 = vld [vmem:[#allocation2 + $0x1b0] sm:$0xff]  ;;  %v3381_v26 = vld [vmem:[#allocation2 + $0x400] sm:$0xff] }
 0x36e   :  { %v1639_v10 = vld [vmem:[#allocation3 + $0x9] sm:$0x7]  ;;  %v3389_v7 = vld [vmem:[#allocation2 + $0x2f8] sm:$0xff]  ;;  %v3372_v8 = vld [vmem:[#allocation2 + $0x130] sm:$0xff] }
 0x36f   :  { %1841 = vmatpush.bf16.msrb.mxu3 %v3375_v13  ;;  %1867 = vmatpush.bf16.msra.mxu1 %v3391_v29  ;;  %1689 = vst [vmem:[#allocation1] ss:$9 sm:$0xff] %v1639_v10  ;;  %v3380_v27 = vld [vmem:[#allocation2 + $0x8] sm:$0xff]  ;;  %v3388_v23 = vld [vmem:[#allocation2 + $0x78] sm:$0xff]  ;;  %v3387_v30 = vld [vmem:[#allocation2 + $0x2d0] sm:$0xff] }
 0x370   :  { %1854 = vmatpush.bf16.msra.mxu0 %v3383_v14  ;;  %v3371_v24 = vld [vmem:[#allocation2 + $0x2a8] sm:$0xff]  ;;  %v3379_v28 = vld [vmem:[#allocation2 + $0x358] sm:$0xff]  ;;  %v3370_v31 = vld [vmem:[#allocation2 + $0x160] sm:$0xff] }
 0x371   :  { %v3378_v5 = vld [vmem:[#allocation2 + $0x1c0] sm:$0xff]  ;;  %v3386_v6 = vld [vmem:[#allocation2 + $0x468] sm:$0xff]  ;;  %v3377_v21 = vld [vmem:[#allocation2 + $0x210] sm:$0xff] }
 0x372   :  { %v3369_v32 = vld [vmem:[#allocation2 + $0x128] sm:$0xff]  ;;  %v3385_v22 = vld [vmem:[#allocation2 + $0xb8] sm:$0xff] }
 0x373   :  { %1842 = vmatpush.bf16.msrb.mxu3 %v3374_v11  ;;  %1868 = vmatpush.bf16.msra.mxu1 %v3390_v9 }
 0x374   :  { %1855 = vmatpush.bf16.msra.mxu0 %v3382_v12 }
 0x376   :  { %v1690_v34 = vld [vmem:[#allocation1] sm:$0xff]  ;;  %v1691_v35 = vld [vmem:[#allocation1 + $0x9] sm:$0xff]  ;;  %v1692_v36 = vld [vmem:[#allocation1 + $0x12] sm:$0xff] }
 0x377   :  { %1843 = vmatpush.bf16.msrb.mxu3 %v3373_v25  ;;  %1869 = vmatpush.bf16.msra.mxu1 %v3389_v7 }
 0x378   :  { %1856 = vmatpush.bf16.msra.mxu0 %v3381_v26 }
 0x37b   :  { %1844 = vmatpush.bf16.msrb.mxu3 %v3372_v8  ;;  %1870 = vmatpush.bf16.msra.mxu1 %v3388_v23 }
 0x37c   :  { %1857 = vmatpush.bf16.msra.mxu0 %v3380_v27 }
 0x37f   :  { %1845 = vmatpush.bf16.msrb.mxu3 %v3371_v24  ;;  %1871 = vmatpush.bf16.msra.mxu1 %v3387_v30 }
 0x380   :  { %1858 = vmatpush.bf16.msra.mxu0 %v3379_v28 }
 0x383   :  { %1846 = vmatpush.bf16.msrb.mxu3 %v3370_v31  ;;  %1872 = vmatpush.bf16.msra.mxu1 %v3386_v6 }
 0x384   :  { %1859 = vmatpush.bf16.msra.mxu0 %v3378_v5 }
 0x387   :  { %1847 = vmatpush.bf16.msrb.mxu3 %v3369_v32  ;;  %1873 = vmatpush.bf16.msra.mxu1 %v3385_v22 }
 0x388   :  { %1860 = vmatpush.bf16.msra.mxu0 %v3377_v21 }
 0x38a   :  { %1848 = vmatmul.bf16.vlgmr.msrb.gmra.mxu3 %v1690_v34  ;;  %1874 = vmatmul.bf16.vlgmr.msra.gmra.mxu1 %v1692_v36 }
 0x38b   :  { %1861 = vmatmul.bf16.vlgmr.msra.gmra.mxu0 %v1691_v35 }
 0x407   :  { %v1875_v47 = vpop.f32.mrf.mxu1 }
 0x408   :  { %v1862_v46 = vpop.f32.mrf.mxu0 }
 0x40d   :  { %v1849_v48 = vpop.f32.mrf.mxu3 }
 0x40e   :  { %v1863_v49 = vadd.f32 %v1862_v46, %v1849_v48 }
 0x40f   :  { %v1877_v63 = vpop.f32.mrf.mxu1 }
 0x410   :  { %v1864_v50 = vpop.f32.mrf.mxu0  ;;  %v1876_v51 = vadd.f32 %v1875_v47, %v1863_v49 }
 0x412   :  { %v4304_v0 = vadd.f32 %v1876_v51, %v4301_v17 }
 0x415   :  { %v1851_v61 = vpop.f32.mrf.mxu3 }
 0x416   :  { %3487 = dma.done.wait [#allocation4 + $0x4], 3072 }
 0x417   :  { %3488 = vsyncadd [#allocation4 + $0x4], 4294964224  ;;  %v3400_v62 = vld [vmem:[#allocation2] sm:$0xff]  ;;  %v3408_v1 = vld [vmem:[#allocation2 + $0x28] sm:$0xff] }
 0x418   :  { %v3416_v2 = vld [vmem:[#allocation2 + $0x340] sm:$0xff]  ;;  %2084 = vmatpush.bf16.msra.mxu2 %v3400_v62  ;;  %2097 = vmatpush.bf16.msra.mxu3 %v3408_v1  ;;  %v3399_v3 = vld [vmem:[#allocation2 + $0x118] sm:$0xff]  ;;  %v3415_v59 = vld [vmem:[#allocation2 + $0x308] sm:$0xff] }
 0x419   :  { %v3407_v4 = vld [vmem:[#allocation2 + $0x180] sm:$0xff]  ;;  %2110 = vmatpush.bf16.msrb.mxu0 %v3416_v2  ;;  %v3398_v60 = vld [vmem:[#allocation2 + $0x1d8] sm:$0xff]  ;;  %v3414_v38 = vld [vmem:[#allocation2 + $0x50] sm:$0xff] }
 0x41a   :  { %v3406_v37 = vld [vmem:[#allocation2 + $0x3b8] sm:$0xff]  ;;  %v1883_v57 = vld [vmem:[#allocation3 + $0xc] sm:$0x7]  ;;  %v3405_v39 = vld [vmem:[#allocation2 + $0x260] sm:$0xff] }
 0x41b   :  { %1933 = vst [vmem:[#allocation1] ss:$9 sm:$0xff] %v1883_v57  ;;  %v3397_v58 = vld [vmem:[#allocation2 + $0xa8] sm:$0xff]  ;;  %v3413_v40 = vld [vmem:[#allocation2 + $0x360] sm:$0xff]  ;;  %v3396_v41 = vld [vmem:[#allocation2 + $0x3d8] sm:$0xff] }
 0x41c   :  { %2085 = vmatpush.bf16.msra.mxu2 %v3399_v3  ;;  %2098 = vmatpush.bf16.msra.mxu3 %v3407_v4  ;;  %v3404_v55 = vld [vmem:[#allocation2 + $0x2d8] sm:$0xff]  ;;  %v3395_v56 = vld [vmem:[#allocation2 + $0x2a0] sm:$0xff]  ;;  %v3393_v45 = vld [vmem:[#allocation2 + $0x110] sm:$0xff] }
 0x41d   :  { %2111 = vmatpush.bf16.msrb.mxu0 %v3415_v59  ;;  %v3412_v52 = vld [vmem:[#allocation2 + $0x158] sm:$0xff]  ;;  %v3411_v43 = vld [vmem:[#allocation2 + $0x440] sm:$0xff]  ;;  %v3409_v20 = vld [vmem:[#allocation2 + $0x108] sm:$0xff] }
 0x41e   :  { %v3403_v42 = vld [vmem:[#allocation2 + $0xd8] sm:$0xff]  ;;  %v3394_v53 = vld [vmem:[#allocation2 + $0x460] sm:$0xff] }
 0x41f   :  { %v3402_v54 = vld [vmem:[#allocation2 + $0x138] sm:$0xff] }
 0x420   :  { %2086 = vmatpush.bf16.msra.mxu2 %v3398_v60  ;;  %2099 = vmatpush.bf16.msra.mxu3 %v3406_v37  ;;  %v3410_v44 = vld [vmem:[#allocation2 + $0x378] sm:$0xff] }
 0x421   :  { %2112 = vmatpush.bf16.msrb.mxu0 %v3414_v38  ;;  %v3401_v19 = vld [vmem:[#allocation2 + $0x478] sm:$0xff] }
 0x422   :  { %v1934_v17 = vld [vmem:[#allocation1] sm:$0xff]  ;;  %v1935_v18 = vld [vmem:[#allocation1 + $0x9] sm:$0xff]  ;;  %v1936_v33 = vld [vmem:[#allocation1 + $0x12] sm:$0xff] }
 0x424   :  { %2087 = vmatpush.bf16.msra.mxu2 %v3397_v58  ;;  %2100 = vmatpush.bf16.msra.mxu3 %v3405_v39 }
 0x425   :  { %2113 = vmatpush.bf16.msrb.mxu0 %v3413_v40 }
 0x428   :  { %2088 = vmatpush.bf16.msra.mxu2 %v3396_v41  ;;  %2101 = vmatpush.bf16.msra.mxu3 %v3404_v55 }
 0x429   :  { %2114 = vmatpush.bf16.msrb.mxu0 %v3412_v52 }
 0x42c   :  { %2089 = vmatpush.bf16.msra.mxu2 %v3395_v56  ;;  %2102 = vmatpush.bf16.msra.mxu3 %v3403_v42 }
 0x42d   :  { %2115 = vmatpush.bf16.msrb.mxu0 %v3411_v43 }
 0x430   :  { %2090 = vmatpush.bf16.msra.mxu2 %v3394_v53  ;;  %2103 = vmatpush.bf16.msra.mxu3 %v3402_v54 }
 0x431   :  { %2116 = vmatpush.bf16.msrb.mxu0 %v3410_v44 }
 0x434   :  { %2091 = vmatpush.bf16.msra.mxu2 %v3393_v45  ;;  %2104 = vmatpush.bf16.msra.mxu3 %v3401_v19 }
 0x435   :  { %2117 = vmatpush.bf16.msrb.mxu0 %v3409_v20 }
 0x437   :  { %2092 = vmatmul.bf16.vlgmr.msra.gmra.mxu2 %v1934_v17  ;;  %2105 = vmatmul.bf16.vlgmr.msra.gmra.mxu3 %v1935_v18 }
 0x438   :  { %2118 = vmatmul.bf16.vlgmr.msrb.gmra.mxu0 %v1936_v33 }
 0x4b5   :  { %v2119_v15 = vpop.f32.mrf.mxu0 }
 0x4ba   :  { %v2093_v16 = vpop.f32.mrf.mxu2  ;;  %v2106_v13 = vpop.f32.mrf.mxu3 }
 0x4bb   :  { %v2107_v14 = vadd.f32 %v2106_v13, %v2093_v16 }
 0x4bd   :  { %v2120_v29 = vadd.f32 %v2119_v15, %v2107_v14  ;;  %v2121_v11 = vpop.f32.mrf.mxu0 }
 0x4bf   :  { %v4307_v12 = vadd.f32 %v2120_v29, %v4304_v0 }
 0x4c2   :  { %v2095_v9 = vpop.f32.mrf.mxu2  ;;  %v2108_v10 = vpop.f32.mrf.mxu3 }
 0x4c3   :  { %3489 = dma.done.wait [#allocation4 + $0x5], 3072 }
 0x4c4   :  { %3490 = vsyncadd [#allocation4 + $0x5], 4294964224  ;;  %v3424_v25 = vld [vmem:[#allocation2 + $0xf0] sm:$0xff]  ;;  %v3432_v26 = vld [vmem:[#allocation2 + $0x428] sm:$0xff]  ;;  %s3494_s20 = smov [#allocation5]   ;;  %s2465_s0 = sshll.u32 %s4352_s9, 4  ;;  %s2466_s0 = int_to_ptr.hbm [resolvable:$true] %s2465_s0 }
 0x4c5   :  { %v3440_v7 = vld [vmem:[#allocation2 + $0x188] sm:$0xff]  ;;  %2328 = vmatpush.bf16.msrb.mxu1 %v3424_v25  ;;  %2341 = vmatpush.bf16.msrb.mxu2 %v3432_v26  ;;  %v3431_v27 = vld [vmem:[#allocation2 + $0x80] sm:$0xff]  ;;  %v3439_v23 = vld [vmem:[#allocation2 + $0x58] sm:$0xff]  ;;  %s2463_s21 = sshll.u32 %s3494_s20, 4  ;;  %vm2456_vm4 = vcmask 58368   ;;  %s2464_s21 = int_to_ptr.vmem [resolvable:$true] %s2463_s21 }
 0x4c6   :  { %v3423_v8 = vld [vmem:[#allocation2 + $0xe8] sm:$0xff]  ;;  %2354 = vmatpush.bf16.msrb.mxu3 %v3440_v7  ;;  %v3422_v24 = vld [vmem:[#allocation2 + $0x3d0] sm:$0xff]  ;;  %v3438_v30 = vld [vmem:[#allocation2 + $0x98] sm:$0xff] }
 0x4c7   :  { %v3430_v28 = vld [vmem:[#allocation2 + $0x430] sm:$0xff]  ;;  %v3429_v32 = vld [vmem:[#allocation2 + $0x388] sm:$0xff]  ;;  %v3428_v35 = vld [vmem:[#allocation2 + $0x38] sm:$0xff] }
 0x4c8   :  { %v2127_v31 = vld [vmem:[#allocation3 + $0xf] sm:$0x7]  ;;  %v3446_v46 = vld [vmem:[%s4349_s6 + $0x28] sm:$0xff]  ;;  %v3434_v63 = vld [vmem:[#allocation2 + $0x2b8] sm:$0xff] }
 0x4c9   :  { %2329 = vmatpush.bf16.msrb.mxu1 %v3423_v8  ;;  %2342 = vmatpush.bf16.msrb.mxu2 %v3431_v27  ;;  %v3448_v5 = vld [vmem:[%s4349_s6 + $0x38] sm:$0xff]  ;;  %2177 = vst [vmem:[#allocation1] ss:$9 sm:$0xff] %v2127_v31  ;;  %v3437_v21 = vld [vmem:[#allocation2 + $0x3a8] sm:$0xff]  ;;  %v3427_v48 = vld [vmem:[#allocation2 + $0x1e0] sm:$0xff] }
 0x4ca   :  { %2355 = vmatpush.bf16.msrb.mxu3 %v3439_v23  ;;  %v3421_v6 = vld [vmem:[#allocation2 + $0x190] sm:$0xff]  ;;  %2443 = vmatpush.bf16.msra.mxu0 %v3448_v5  ;;  %v3447_v22 = vld [vmem:[%s4349_s6 + $0x30] sm:$0xff]  ;;  %v3435_v49 = vld [vmem:[#allocation2 + $0x40] sm:$0xff] }
 0x4cb   :  { %v3420_v34 = vld [vmem:[#allocation2 + $0x1c8] sm:$0xff]  ;;  %v3436_v36 = vld [vmem:[#allocation2 + $0x150] sm:$0xff]  ;;  %v3417_v0 = vld [vmem:[#allocation2 + $0x2e0] sm:$0xff] }
 0x4cc   :  { %v3419_v47 = vld [vmem:[#allocation2 + $0x250] sm:$0xff]  ;;  %v3418_v50 = vld [vmem:[#allocation2 + $0x3e8] sm:$0xff]  ;;  %v3433_v62 = vld [vmem:[#allocation2 + $0x238] sm:$0xff] }
 0x4cd   :  { %2330 = vmatpush.bf16.msrb.mxu1 %v3422_v24  ;;  %2343 = vmatpush.bf16.msrb.mxu2 %v3430_v28  ;;  %v3426_v51 = vld [vmem:[#allocation2 + $0x90] sm:$0xff]  ;;  %v3425_v61 = vld [vmem:[#allocation2 + $0x168] sm:$0xff]  ;;  %v3445_v4 = vld [vmem:[%s4349_s6 + $0x20] sm:$0xff] }
 0x4ce   :  { %2356 = vmatpush.bf16.msrb.mxu3 %v3438_v30  ;;  %2444 = vmatpush.bf16.msra.mxu0 %v3447_v22  ;;  %v3444_v59 = vld [vmem:[%s4349_s6 + $0x18] sm:$0xff]  ;;  %v3443_v60 = vld [vmem:[%s4349_s6 + $0x10] sm:$0xff]  ;;  %v3442_v37 = vld [vmem:[%s4349_s6 + $0x8] sm:$0xff] }
 0x4cf   :  { %v3441_v38 = vld [vmem:[%s4349_s6] sm:$0xff] }
 0x4d0   :  { %v2178_v1 = vld [vmem:[#allocation1] sm:$0xff]  ;;  %v2179_v2 = vld [vmem:[#allocation1 + $0x9] sm:$0xff]  ;;  %v2180_v3 = vld [vmem:[#allocation1 + $0x12] sm:$0xff] }
 0x4d1   :  { %2331 = vmatpush.bf16.msrb.mxu1 %v3421_v6  ;;  %2344 = vmatpush.bf16.msrb.mxu2 %v3429_v32  ;;  %v3453_v52 = vld [vmem:[%s4348_s5] ss:$0 sm:$0xff] }
 0x4d2   :  { %2357 = vmatpush.bf16.msrb.mxu3 %v3437_v21  ;;  %2445 = vmatpush.bf16.msra.mxu0 %v3446_v46  ;;  %v3454_v45 = vld [vmem:[%s4350_s7] ss:$0 sm:$0xff] }
 0x4d5   :  { %2332 = vmatpush.bf16.msrb.mxu1 %v3420_v34  ;;  %2345 = vmatpush.bf16.msrb.mxu2 %v3428_v35 }
 0x4d6   :  { %2358 = vmatpush.bf16.msrb.mxu3 %v3436_v36  ;;  %2446 = vmatpush.bf16.msra.mxu0 %v3445_v4 }
 0x4d9   :  { %2333 = vmatpush.bf16.msrb.mxu1 %v3419_v47  ;;  %2346 = vmatpush.bf16.msrb.mxu2 %v3427_v48 }
 0x4da   :  { %2359 = vmatpush.bf16.msrb.mxu3 %v3435_v49  ;;  %2447 = vmatpush.bf16.msra.mxu0 %v3444_v59 }
 0x4dd   :  { %2334 = vmatpush.bf16.msrb.mxu1 %v3418_v50  ;;  %2347 = vmatpush.bf16.msrb.mxu2 %v3426_v51 }
 0x4de   :  { %2360 = vmatpush.bf16.msrb.mxu3 %v3434_v63  ;;  %2448 = vmatpush.bf16.msra.mxu0 %v3443_v60 }
 0x4e1   :  { %2335 = vmatpush.bf16.msrb.mxu1 %v3417_v0  ;;  %2348 = vmatpush.bf16.msrb.mxu2 %v3425_v61 }
 0x4e2   :  { %2361 = vmatpush.bf16.msrb.mxu3 %v3433_v62  ;;  %2449 = vmatpush.bf16.msra.mxu0 %v3442_v37 }
 0x4e4   :  { %2336 = vmatmul.bf16.vlgmr.msrb.gmra.mxu1 %v2178_v1  ;;  %2349 = vmatmul.bf16.vlgmr.msrb.gmra.mxu2 %v2179_v2 }
 0x4e5   :  { %2362 = vmatmul.bf16.vlgmr.msrb.gmra.mxu3 %v2180_v3 }
 0x4e6   :  { %2450 = vmatpush.bf16.msra.mxu0 %v3441_v38 }
 0x561   :  { %v2337_v57 = vpop.f32.mrf.mxu1 }
 0x567   :  { %v2350_v58 = vpop.f32.mrf.mxu2 }
 0x568   :  { %v2351_v39 = vadd.f32 %v2350_v58, %v2337_v57  ;;  %v2363_v40 = vpop.f32.mrf.mxu3 }
 0x569   :  { %v2339_v41 = vpop.f32.mrf.mxu1 }
 0x56a   :  { %v2364_v55 = vadd.f32 %v2363_v40, %v2351_v39 }
 0x56c   :  { %v2367_v56 = vadd.f32 %v2364_v55, %v4307_v12 }
 0x56e   :  { %v2372_v42 = vadd.f32 %v3453_v52, %v2367_v56 }
 0x56f   :  { %v2352_v43 = vpop.f32.mrf.mxu2 }
 0x570   :  { %v2365_v53 = vpop.f32.mrf.mxu3  ;;  %v2373_v54 = vmax.f32 %v2372_v42, 0.0 }
 0x572   :  { %v2374_v44 = vpack.c.bf16 %v2373_v54, %v2373_v54 }
 0x574   :  { %2451 = vmatmul.bf16.vlgmr.msra.gmra.mxu0 %v2374_v44 }
 0x5f1   :  { %v2452_v19 = vpop.f32.mrf.mxu0 }
 0x5f2   :  { %v2453_v20 = vadd.f32 %v3454_v45, %v2452_v19 }
 0x5f4   :  { %2457 = vst.msk [vmem:[#allocation5] sm:$0x3] %vm2456_vm4, %v2453_v20 }
 0x5f5   :  { %2468 = dma.vmem_to_hbm [thread:$0]  %s2464_s21, 32, %s2466_s0, [#allocation6]  }
 0x5f9   :  { %v2454_v17 = vpop.f32.mrf.mxu0 }
 0x5fa   :  { %3491 = dma.done.wait [#allocation6], 32  }
 0x5fb   :  { %3492 = vsyncadd [#allocation6], 4294967264 }
 0x5fc   :  { %2473 = vsyncpa [#allocation6], 1 }
 0x5fd   :  { %2474 = vsyncmov [#allocation4] }
 0x600   :  { %s2475_s5 = vpop.sfrf %2474 }
 0x601   :  { %p3291_p0 = scmp.ne.s32.totalorder %s2475_s5, 0 }
 0x603   :  { %2479 = shalt.err (%p3291_p0)  }
 0x604   :  { %2481 = vsyncmov [#allocation4 + $0x1] }
 0x607   :  { %s2482_s7 = vpop.sfrf %2481 }
 0x608   :  { %p3292_p1 = scmp.ne.s32.totalorder %s2482_s7, 0 }
 0x60a   :  { %2486 = shalt.err (%p3292_p1)  }
 0x60b   :  { %2488 = vsyncmov [#allocation4 + $0x2] }
 0x60e   :  { %s2489_s9 = vpop.sfrf %2488 }
 0x60f   :  { %p3293_p2 = scmp.ne.s32.totalorder %s2489_s9, 0 }
 0x611   :  { %2493 = shalt.err (%p3293_p2)  }
 0x612   :  { %2495 = vsyncmov [#allocation4 + $0x3] }
 0x615   :  { %s2496_s2 = vpop.sfrf %2495 }
 0x616   :  { %p3294_p3 = scmp.ne.s32.totalorder %s2496_s2, 0 }
 0x618   :  { %2500 = shalt.err (%p3294_p3)  }
 0x619   :  { %2502 = vsyncmov [#allocation4 + $0x4] }
 0x61c   :  { %s2503_s23 = vpop.sfrf %2502 }
 0x61d   :  { %p3295_p4 = scmp.ne.s32.totalorder %s2503_s23, 0 }
 0x61f   :  { %2507 = shalt.err (%p3295_p4)  }
 0x620   :  { %2509 = vsyncmov [#allocation4 + $0x5] }
 0x623   :  { %s2510_s24 = vpop.sfrf %2509 }
 0x624   :  { %p3296_p5 = scmp.ne.s32.totalorder %s2510_s24, 0 }
 0x626   :  { %2514 = shalt.err (%p3296_p5)  }

</bundles_post_ra>
